<compile_context>
chip_gen: v7x
topology: tpu7x:2x2x1
jax: 0.10.0
libtpu: 0.0.40
codegen_flags: <defaults>
</compile_context>

<pallas_src>
import math
import functools

import jax
import jax.numpy as jnp
from jax.experimental import pallas as pl
from jax.experimental.pallas import tpu as pltpu

NEG_INF = -1e30  # finite "minus infinity": avoids inf-inf corner cases in the update


def _fused_causal_attn_kernel(x_q_ref, x_kv_ref, w_attn_ref, b_attn_ref,
                              w_proj_ref, b_proj_ref, out_ref,
                              q_scr, m_scr, l_scr, acc_scr,
                              *, n_head, head_dim, q_block, kv_block):
    H, D = n_head, head_dim
    C = H * D
    TQ, TK = q_block, kv_block

    qi = pl.program_id(1)
    ki = pl.program_id(2)
    num_kv = pl.num_programs(2)

    cdt = x_q_ref.dtype  # MXU operand dtype (f32 or bf16); accumulation stays f32

    # ---- once per (batch, q-tile): project Q, reset online-softmax state -------
    @pl.when(ki == 0)
    def _init():
        xq = x_q_ref[...]                                              # (TQ, C)
        q = jnp.dot(xq, w_attn_ref[:, 0:C],
                    preferred_element_type=jnp.float32) + b_attn_ref[0, 0:C]
        q = q * (1.0 / math.sqrt(D))                                   # fold scale in
        # (TQ, C) -> (H, TQ, D): single relayout per q-tile (not per head / per step)
        q_scr[...] = q.reshape(TQ, H, D).transpose(1, 0, 2).astype(cdt)
        m_scr[...] = jnp.full_like(m_scr, NEG_INF)
        l_scr[...] = jnp.zeros_like(l_scr)
        acc_scr[...] = jnp.zeros_like(acc_scr)

    # ---- skip KV tiles that lie entirely above the causal diagonal -------------
    @pl.when(ki * TK < (qi + 1) * TQ)
    def _compute():
        xkv = x_kv_ref[...]                                            # (TK, C)
        # K and V in one wide matmul: (TK, C) @ (C, 2C)
        # NOTE: K/V projection is recomputed per q-tile; for very long sequences
        # hoist it into a separate pallas_call (accepted trade-off here).
        kv = jnp.dot(xkv, w_attn_ref[:, C:3 * C],
                     preferred_element_type=jnp.float32) + b_attn_ref[0, C:3 * C]
        k = kv[:, 0:C].reshape(TK, H, D).transpose(1, 0, 2).astype(cdt)      # (H, TK, D)
        v = kv[:, C:2 * C].reshape(TK, H, D).transpose(1, 0, 2).astype(cdt)  # (H, TK, D)

        # All heads through one batched MXU contraction; contraction on native
        # last dims (no explicit k.T transpose).
        s = jnp.einsum('hqd,hkd->hqk', q_scr[...], k,
                       preferred_element_type=jnp.float32)             # (H, TQ, TK) f32

        # per-tile causal mask (offset iotas; only needed on/below the diagonal band)
        row = qi * TQ + jax.lax.broadcasted_iota(jnp.int32, (TQ, TK), 0)
        col = ki * TK + jax.lax.broadcasted_iota(jnp.int32, (TQ, TK), 1)
        s = jnp.where((row >= col)[None, :, :], s, NEG_INF)

        # online (flash) softmax update, all in f32
        m_prev = m_scr[...]                                            # (H, TQ, 1)
        m_new = jnp.maximum(m_prev, jnp.max(s, axis=-1, keepdims=True))
        alpha = jnp.exp(m_prev - m_new)
        p = jnp.exp(s - m_new)                                         # (H, TQ, TK)
        l_scr[...] = alpha * l_scr[...] + jnp.sum(p, axis=-1, keepdims=True)
        acc_scr[...] = alpha * acc_scr[...] + jnp.einsum(
            'hqk,hkd->hqd', p.astype(cdt), v,
            preferred_element_type=jnp.float32)                        # (H, TQ, D)
        m_scr[...] = m_new

    # ---- once per (batch, q-tile): normalize + output projection ---------------
    @pl.when(ki == num_kv - 1)
    def _finalize():
        inv_l = pl.reciprocal(l_scr[...], approx=True)                 # EUP rcp (free slot)
        inv_l = inv_l * (2.0 - l_scr[...] * inv_l)                     # 1 Newton step -> ~f32 exact
        y = acc_scr[...] * inv_l                                       # (H, TQ, D) f32
        y = y.transpose(1, 0, 2).reshape(TQ, C).astype(cdt)            # (TQ, C)
        out = jnp.dot(y, w_proj_ref[...],
                      preferred_element_type=jnp.float32) + b_proj_ref[0]
        out_ref[...] = out.astype(out_ref.dtype)                       # lane-dense (TQ, C) store


def _pick_block(total, preferred):
    if total <= preferred:
        return total
    if total % preferred == 0:
        return preferred
    return total  # fallback: single block over the full axis


def causal_self_attention(x, w_attn, b_attn, w_proj, b_proj, *, n_head,
                          q_block=None, kv_block=None, compute_dtype=None):
    """Fused causal self-attention forward (eval mode, dropout=0).

    x:       (B, T, C)
    w_attn:  (C, 3C)   == c_attn.weight.T     b_attn: (1, 3C)
    w_proj:  (C, C)    == c_proj.weight.T     b_proj: (1, C)
    """
    B, T, C = x.shape
    assert C % n_head == 0
    D = C // n_head
    out_dtype = x.dtype

    cdt = jnp.dtype(compute_dtype) if compute_dtype is not None else x.dtype
    # Cast MXU operands in the wrapper (also halves HBM->VMEM traffic for bf16).
    # Biases stay f32; softmax / accumulation are f32 inside the kernel.
    x_c = x.astype(cdt)
    w_attn_c = w_attn.astype(cdt)
    w_proj_c = w_proj.astype(cdt)
    b_attn_f = b_attn.astype(jnp.float32)
    b_proj_f = b_proj.astype(jnp.float32)

    TQ = q_block or _pick_block(T, 256)
    TK = kv_block or _pick_block(T, 512)
    assert T % TQ == 0 and T % TK == 0, "q_block / kv_block must divide T"

    grid = (B, T // TQ, T // TK)

    kernel = functools.partial(_fused_causal_attn_kernel, n_head=n_head,
                               head_dim=D, q_block=TQ, kv_block=TK)

    # Explicit scoped-VMEM sizing (v5e default is only 16 MiB; v7x physical is 64 MiB).
    ib = jnp.dtype(cdt).itemsize
    ob = jnp.dtype(out_dtype).itemsize
    est = (2 * (TQ * C + TK * C) * ib               # double-buffered x blocks (Q + KV)
           + 2 * TQ * C * ob                        # double-buffered out block
           + 2 * (C * 3 * C + C * C) * ib           # weight blocks
           + 2 * 4 * C * 4                          # bias blocks
           + n_head * TQ * D * (ib + 4)             # q + acc scratch
           + 2 * n_head * TQ * 128 * 4)             # m / l scratch (lane-padded)
    vmem_limit = int(min(max(2 * est, 16 * 1024 * 1024), 56 * 1024 * 1024))

    return pl.pallas_call(
        kernel,
        out_shape=jax.ShapeDtypeStruct((B, T, C), out_dtype),
        grid_spec=pltpu.PrefetchScalarGridSpec(
            num_scalar_prefetch=0,
            grid=grid,
            in_specs=[
                # size-1 batch dim squeezed out of the kernel view
                pl.BlockSpec((pl.Squeezed(), TQ, C), lambda b, qi, ki: (b, qi, 0)),  # x (Q rows)
                pl.BlockSpec((pl.Squeezed(), TK, C), lambda b, qi, ki: (b, ki, 0)),  # x (KV rows)
                # Constant index maps -> these blocks are only DMA'd once.
                # (pipeline_mode=pl.Buffered(1) would also single-buffer them;
                #  left at the default for maximum compatibility.)
                pl.BlockSpec((C, 3 * C), lambda b, qi, ki: (0, 0)),                  # w_attn
                pl.BlockSpec((1, 3 * C), lambda b, qi, ki: (0, 0)),                  # b_attn
                pl.BlockSpec((C, C), lambda b, qi, ki: (0, 0)),                      # w_proj
                pl.BlockSpec((1, C), lambda b, qi, ki: (0, 0)),                      # b_proj
            ],
            out_specs=pl.BlockSpec((pl.Squeezed(), TQ, C), lambda b, qi, ki: (b, qi, 0)),
            scratch_shapes=[
                pltpu.VMEM((n_head, TQ, D), cdt),           # pre-scaled Q
                pltpu.VMEM((n_head, TQ, 1), jnp.float32),   # running max
                pltpu.VMEM((n_head, TQ, 1), jnp.float32),   # running denom
                pltpu.VMEM((n_head, TQ, D), jnp.float32),   # output accumulator
            ],
        ),
        compiler_params=pltpu.CompilerParams(
            dimension_semantics=("parallel", "parallel", "arbitrary"),
            vmem_limit_bytes=vmem_limit,
        ),
    )(x_c, x_c, w_attn_c, b_attn_f, w_proj_c, b_proj_f)


def reference(x, w_attn, b_attn, w_proj, b_proj, *, n_head):
    """Pure-JAX reference mirroring the PyTorch forward (eval mode, no dropout)."""
    B, T, C = x.shape
    D = C // n_head
    qkv = jnp.einsum('btc,cd->btd', x, w_attn) + b_attn[0]
    q, k, v = jnp.split(qkv, 3, axis=-1)
    q = q.reshape(B, T, n_head, D).transpose(0, 2, 1, 3)
    k = k.reshape(B, T, n_head, D).transpose(0, 2, 1, 3)
    v = v.reshape(B, T, n_head, D).transpose(0, 2, 1, 3)
    att = jnp.einsum('bhqd,bhkd->bhqk', q, k) / math.sqrt(D)
    mask = jnp.tril(jnp.ones((T, T), dtype=bool))
    att = jnp.where(mask[None, None], att, -jnp.inf)
    att = jax.nn.softmax(att, axis=-1)
    y = jnp.einsum('bhqk,bhkd->bhqd', att, v)
    y = y.transpose(0, 2, 1, 3).reshape(B, T, C)
    return jnp.einsum('btc,cd->btd', y, w_proj) + b_proj[0]


if __name__ == "__main__":
    # config: n_embd=32, n_head=4, block_size=8, dropout=0.0, bias=True
    B, T, C, n_head = 2, 8, 32, 4

    key = jax.random.PRNGKey(0)
    kx, k1, k2, k3, k4 = jax.random.split(key, 5)

    x = jax.random.normal(kx, (B, T, C), dtype=jnp.float32)
    # Linear weights stored as (in_features, out_features) == PyTorch weight.T
    w_attn = jax.random.normal(k1, (C, 3 * C), dtype=jnp.float32) * (1.0 / math.sqrt(C))
    b_attn = jax.random.normal(k2, (1, 3 * C), dtype=jnp.float32) * 0.02
    w_proj = jax.random.normal(k3, (C, C), dtype=jnp.float32) * (1.0 / math.sqrt(C))
    b_proj = jax.random.normal(k4, (1, C), dtype=jnp.float32) * 0.02

    ref = reference(x, w_attn, b_attn, w_proj, b_proj, n_head=n_head)

    # 1) single-tile path (T == q_block == kv_block), f32 operands
    out = causal_self_attention(x, w_attn, b_attn, w_proj, b_proj, n_head=n_head)
    out = jax.block_until_ready(out)
    assert jnp.allclose(out, ref, atol=1e-3, rtol=1e-3), "mismatch vs reference (f32)"

    # 2) multi-tile path: exercises online-softmax accumulation + causal tile skip
    T2 = 32
    x2 = jax.random.normal(jax.random.PRNGKey(1), (B, T2, C), dtype=jnp.float32)
    ref2 = reference(x2, w_attn, b_attn, w_proj, b_proj, n_head=n_head)
    out2 = causal_self_attention(x2, w_attn, b_attn, w_proj, b_proj, n_head=n_head,
                                 q_block=8, kv_block=8)
    out2 = jax.block_until_ready(out2)
    assert jnp.allclose(out2, ref2, atol=1e-3, rtol=1e-3), "mismatch vs reference (tiled)"

    # 3) bf16 MXU-operand path (accumulation stays f32) -- loose tolerance
    out_bf = causal_self_attention(x, w_attn, b_attn, w_proj, b_proj, n_head=n_head,
                                   compute_dtype=jnp.bfloat16)
    out_bf = jax.block_until_ready(out_bf)
    assert jnp.allclose(out_bf.astype(jnp.float32), ref, atol=1e-1, rtol=1e-1), \
        "mismatch vs reference (bf16)"

    print("KERNEL_OK")
</pallas_src>

<mosaic_0001>
module attributes {stable_mosaic.version = 11 : i64} {
  func.func @_fused_causal_attn_kernel(%arg0: i32, %arg1: i32, %arg2: i32, %arg3: memref<1x8x32xf32, #tpu.memory_space<vmem>>, %arg4: memref<1x8x32xf32, #tpu.memory_space<vmem>>, %arg5: memref<32x96xf32, #tpu.memory_space<vmem>>, %arg6: memref<1x96xf32, #tpu.memory_space<vmem>>, %arg7: memref<32x32xf32, #tpu.memory_space<vmem>>, %arg8: memref<1x32xf32, #tpu.memory_space<vmem>>, %arg9: memref<1x8x32xf32, #tpu.memory_space<vmem>>, %arg10: memref<4x8x8xf32, #tpu.memory_space<vmem>>, %arg11: memref<4x8x1xf32, #tpu.memory_space<vmem>>, %arg12: memref<4x8x1xf32, #tpu.memory_space<vmem>>, %arg13: memref<4x8x8xf32, #tpu.memory_space<vmem>>) attributes {dimension_semantics = [#tpu.dimension_semantics<parallel>, #tpu.dimension_semantics<parallel>, #tpu.dimension_semantics<arbitrary>], iteration_bounds = array<i64: 2, 1, 1>, scalar_prefetch = 0 : i64, scratch_operands = 4 : i64, tpu.core_type = #tpu.core_type<tc>, window_params = [{transform_indices = @transform_0, window_bounds = array<i64: 1, 8, 32>}, {transform_indices = @transform_1, window_bounds = array<i64: 1, 8, 32>}, {pipeline_mode = #tpu.pipeline_mode<synchronous>, transform_indices = @transform_2, window_bounds = array<i64: 32, 96>}, {pipeline_mode = #tpu.pipeline_mode<synchronous>, transform_indices = @transform_3, window_bounds = array<i64: 1, 96>}, {pipeline_mode = #tpu.pipeline_mode<synchronous>, transform_indices = @transform_4, window_bounds = array<i64: 32, 32>}, {pipeline_mode = #tpu.pipeline_mode<synchronous>, transform_indices = @transform_5, window_bounds = array<i64: 1, 32>}, {transform_indices = @transform_6, window_bounds = array<i64: 1, 8, 32>}]} {
    %c0_i32 = arith.constant 0 : i32
    %0 = arith.cmpi eq, %arg2, %c0_i32 : i32
    %1 = arith.extui %0 : i1 to i32
    %c0_i32_0 = arith.constant 0 : i32
    %2 = arith.cmpi ne, %1, %c0_i32_0 : i32
    scf.if %2 {
      %c0 = arith.constant 0 : index
      %c0_5 = arith.constant 0 : index
      %c0_6 = arith.constant 0 : index
      %12 = vector.load %arg3[%c0, %c0_5, %c0_6] : memref<1x8x32xf32, #tpu.memory_space<vmem>>, vector<1x8x32xf32>
      %13 = vector.shape_cast %12 : vector<1x8x32xf32> to vector<8x32xf32>
      %c0_7 = arith.constant 0 : index
      %c0_8 = arith.constant 0 : index
      %14 = vector.load %arg5[%c0_7, %c0_8] : memref<32x96xf32, #tpu.memory_space<vmem>>, vector<32x32xf32>
      %cst = arith.constant dense<0.000000e+00> : vector<8x32xf32>
      %15 = tpu.matmul %13, %14, %cst {dimension_numbers = #tpu.dot_dimension_numbers<[1], [0], [0], [1], [0, 0, 1, 1], [], []>} : vector<8x32xf32>, vector<32x32xf32>, vector<8x32xf32> -> vector<8x32xf32>
      %c0_9 = arith.constant 0 : index
      %c0_10 = arith.constant 0 : index
      %16 = vector.load %arg6[%c0_9, %c0_10] : memref<1x96xf32, #tpu.memory_space<vmem>>, vector<1x32xf32>
      %17 = vector.shape_cast %16 : vector<1x32xf32> to vector<32xf32>
      %18 = vector.shape_cast %17 : vector<32xf32> to vector<1x32xf32>
      %19 = vector.broadcast %18 : vector<1x32xf32> to vector<8x32xf32>
      %20 = arith.addf %15, %19 : vector<8x32xf32>
      %cst_11 = arith.constant 0.353553385 : f32
      %21 = vector.broadcast %cst_11 : f32 to vector<8x32xf32>
      %22 = arith.mulf %20, %21 : vector<8x32xf32>
      %23 = vector.shape_cast %22 : vector<8x32xf32> to vector<8x4x8xf32>
      %24 = tpu.transpose %23, [1, 0, 2] : vector<8x4x8xf32> -> vector<4x8x8xf32>
      %c0_12 = arith.constant 0 : index
      %c0_13 = arith.constant 0 : index
      %c0_14 = arith.constant 0 : index
      %25 = vector.load %arg10[%c0_12, %c0_13, %c0_14] : memref<4x8x8xf32, #tpu.memory_space<vmem>>, vector<4x8x8xf32>
      tpu.vector_store %arg10[%c0_12, %c0_13, %c0_14], %24 {strides = array<i32>} : memref<4x8x8xf32, #tpu.memory_space<vmem>>, vector<4x8x8xf32>,
      %cst_15 = arith.constant -1.000000e+30 : f32
      %26 = vector.broadcast %cst_15 : f32 to vector<4x8x1xf32>
      %c0_16 = arith.constant 0 : index
      %c0_17 = arith.constant 0 : index
      %c0_18 = arith.constant 0 : index
      %27 = vector.load %arg11[%c0_16, %c0_17, %c0_18] : memref<4x8x1xf32, #tpu.memory_space<vmem>>, vector<4x8x1xf32>
      tpu.vector_store %arg11[%c0_16, %c0_17, %c0_18], %26 {strides = array<i32>} : memref<4x8x1xf32, #tpu.memory_space<vmem>>, vector<4x8x1xf32>,
      %cst_19 = arith.constant 0.000000e+00 : f32
      %28 = vector.broadcast %cst_19 : f32 to vector<4x8x1xf32>
      %c0_20 = arith.constant 0 : index
      %c0_21 = arith.constant 0 : index
      %c0_22 = arith.constant 0 : index
      %29 = vector.load %arg12[%c0_20, %c0_21, %c0_22] : memref<4x8x1xf32, #tpu.memory_space<vmem>>, vector<4x8x1xf32>
      tpu.vector_store %arg12[%c0_20, %c0_21, %c0_22], %28 {strides = array<i32>} : memref<4x8x1xf32, #tpu.memory_space<vmem>>, vector<4x8x1xf32>,
      %cst_23 = arith.constant 0.000000e+00 : f32
      %30 = vector.broadcast %cst_23 : f32 to vector<4x8x8xf32>
      %c0_24 = arith.constant 0 : index
      %c0_25 = arith.constant 0 : index
      %c0_26 = arith.constant 0 : index
      %31 = vector.load %arg13[%c0_24, %c0_25, %c0_26] : memref<4x8x8xf32, #tpu.memory_space<vmem>>, vector<4x8x8xf32>
      tpu.vector_store %arg13[%c0_24, %c0_25, %c0_26], %30 {strides = array<i32>} : memref<4x8x8xf32, #tpu.memory_space<vmem>>, vector<4x8x8xf32>,
    } else {
    }
    %c8_i32 = arith.constant 8 : i32
    %3 = arith.muli %arg2, %c8_i32 : i32
    %c1_i32 = arith.constant 1 : i32
    %4 = arith.addi %arg1, %c1_i32 : i32
    %c8_i32_1 = arith.constant 8 : i32
    %5 = arith.muli %4, %c8_i32_1 : i32
    %6 = arith.cmpi slt, %3, %5 : i32
    %7 = arith.extui %6 : i1 to i32
    %c0_i32_2 = arith.constant 0 : i32
    %8 = arith.cmpi ne, %7, %c0_i32_2 : i32
    scf.if %8 {
      %c0 = arith.constant 0 : index
      %c0_5 = arith.constant 0 : index
      %c0_6 = arith.constant 0 : index
      %12 = vector.load %arg4[%c0, %c0_5, %c0_6] : memref<1x8x32xf32, #tpu.memory_space<vmem>>, vector<1x8x32xf32>
      %13 = vector.shape_cast %12 : vector<1x8x32xf32> to vector<8x32xf32>
      %c0_7 = arith.constant 0 : index
      %c32 = arith.constant 32 : index
      %14 = vector.load %arg5[%c0_7, %c32] : memref<32x96xf32, #tpu.memory_space<vmem>>, vector<32x64xf32>
      %cst = arith.constant dense<0.000000e+00> : vector<8x64xf32>
      %15 = tpu.matmul %13, %14, %cst {dimension_numbers = #tpu.dot_dimension_numbers<[1], [0], [0], [1], [0, 0, 1, 1], [], []>} : vector<8x32xf32>, vector<32x64xf32>, vector<8x64xf32> -> vector<8x64xf32>
      %c0_8 = arith.constant 0 : index
      %c32_9 = arith.constant 32 : index
      %16 = vector.load %arg6[%c0_8, %c32_9] : memref<1x96xf32, #tpu.memory_space<vmem>>, vector<1x64xf32>
      %17 = vector.shape_cast %16 : vector<1x64xf32> to vector<64xf32>
      %18 = vector.shape_cast %17 : vector<64xf32> to vector<1x64xf32>
      %19 = vector.broadcast %18 : vector<1x64xf32> to vector<8x64xf32>
      %20 = arith.addf %15, %19 : vector<8x64xf32>
      %21 = vector.extract_strided_slice %20 {offsets = [0, 0], sizes = [8, 32], strides = [1, 1]} : vector<8x64xf32> to vector<8x32xf32>
      %22 = vector.shape_cast %21 : vector<8x32xf32> to vector<8x4x8xf32>
      %23 = tpu.transpose %22, [1, 0, 2] : vector<8x4x8xf32> -> vector<4x8x8xf32>
      %24 = vector.extract_strided_slice %20 {offsets = [0, 32], sizes = [8, 32], strides = [1, 1]} : vector<8x64xf32> to vector<8x32xf32>
      %25 = vector.shape_cast %24 : vector<8x32xf32> to vector<8x4x8xf32>
      %26 = tpu.transpose %25, [1, 0, 2] : vector<8x4x8xf32> -> vector<4x8x8xf32>
      %c0_10 = arith.constant 0 : index
      %c0_11 = arith.constant 0 : index
      %c0_12 = arith.constant 0 : index
      %27 = vector.load %arg10[%c0_10, %c0_11, %c0_12] : memref<4x8x8xf32, #tpu.memory_space<vmem>>, vector<4x8x8xf32>
      "tpu.trace_start"() <{level = 10 : i32, message = "hqd,hkd->hqk"}> : () -> ()
      %cst_13 = arith.constant dense<0.000000e+00> : vector<4x8x8xf32>
      %28 = tpu.matmul %27, %23, %cst_13 {dimension_numbers = #tpu.dot_dimension_numbers<[2], [2], [1], [1], [0, 0, 0, 1, 1, 1], [0], [0]>} : vector<4x8x8xf32>, vector<4x8x8xf32>, vector<4x8x8xf32> -> vector<4x8x8xf32>
      "tpu.trace_stop"() : () -> ()
      %c8_i32_14 = arith.constant 8 : i32
      %29 = arith.muli %arg1, %c8_i32_14 : i32
      %30 = tpu.iota {dimensions = array<i32: 0>} : vector<8x8xi32>
      %31 = vector.broadcast %29 : i32 to vector<8x8xi32>
      %32 = arith.addi %31, %30 : vector<8x8xi32>
      %c8_i32_15 = arith.constant 8 : i32
      %33 = arith.muli %arg2, %c8_i32_15 : i32
      %34 = tpu.iota {dimensions = array<i32: 1>} : vector<8x8xi32>
      %35 = vector.broadcast %33 : i32 to vector<8x8xi32>
      %36 = arith.addi %35, %34 : vector<8x8xi32>
      %37 = arith.cmpi sge, %32, %36 : vector<8x8xi32>
      %38 = vector.shape_cast %37 : vector<8x8xi1> to vector<1x8x8xi1>
      %cst_16 = arith.constant -1.000000e+30 : f32
      %39 = vector.shape_cast %38 : vector<1x8x8xi1> to vector<1x8x8xi1>
      %40 = vector.broadcast %39 : vector<1x8x8xi1> to vector<4x8x8xi1>
      %41 = vector.broadcast %cst_16 : f32 to vector<4x8x8xf32>
      %42 = arith.select %40, %28, %41 : vector<4x8x8xi1>, vector<4x8x8xf32>
      %c0_17 = arith.constant 0 : index
      %c0_18 = arith.constant 0 : index
      %c0_19 = arith.constant 0 : index
      %43 = vector.load %arg11[%c0_17, %c0_18, %c0_19] : memref<4x8x1xf32, #tpu.memory_space<vmem>>, vector<4x8x1xf32>
      %cst_20 = arith.constant dense<0xFF800000> : vector<4x8xf32>
      %44 = vector.multi_reduction <maximumf>, %42, %cst_20 [2] : vector<4x8x8xf32> to vector<4x8xf32>
      %45 = vector.shape_cast %44 : vector<4x8xf32> to vector<4x8x1xf32>
      %46 = arith.maximumf %43, %45 : vector<4x8x1xf32>
      %47 = arith.subf %43, %46 : vector<4x8x1xf32>
      %48 = math.exp %47 : vector<4x8x1xf32>
      %49 = vector.broadcast %46 : vector<4x8x1xf32> to vector<4x8x8xf32>
      %50 = arith.subf %42, %49 : vector<4x8x8xf32>
      %51 = math.exp %50 : vector<4x8x8xf32>
      %c0_21 = arith.constant 0 : index
      %c0_22 = arith.constant 0 : index
      %c0_23 = arith.constant 0 : index
      %52 = vector.load %arg12[%c0_21, %c0_22, %c0_23] : memref<4x8x1xf32, #tpu.memory_space<vmem>>, vector<4x8x1xf32>
      %53 = arith.mulf %48, %52 : vector<4x8x1xf32>
      %cst_24 = arith.constant dense<0.000000e+00> : vector<4x8xf32>
      %54 = vector.multi_reduction <add>, %51, %cst_24 [2] : vector<4x8x8xf32> to vector<4x8xf32>
      %55 = vector.shape_cast %54 : vector<4x8xf32> to vector<4x8x1xf32>
      %56 = arith.addf %53, %55 : vector<4x8x1xf32>
      %c0_25 = arith.constant 0 : index
      %c0_26 = arith.constant 0 : index
      %c0_27 = arith.constant 0 : index
      %57 = vector.load %arg12[%c0_25, %c0_26, %c0_27] : memref<4x8x1xf32, #tpu.memory_space<vmem>>, vector<4x8x1xf32>
      tpu.vector_store %arg12[%c0_25, %c0_26, %c0_27], %56 {strides = array<i32>} : memref<4x8x1xf32, #tpu.memory_space<vmem>>, vector<4x8x1xf32>,
      %c0_28 = arith.constant 0 : index
      %c0_29 = arith.constant 0 : index
      %c0_30 = arith.constant 0 : index
      %58 = vector.load %arg13[%c0_28, %c0_29, %c0_30] : memref<4x8x8xf32, #tpu.memory_space<vmem>>, vector<4x8x8xf32>
      %59 = vector.broadcast %48 : vector<4x8x1xf32> to vector<4x8x8xf32>
      %60 = arith.mulf %59, %58 : vector<4x8x8xf32>
      "tpu.trace_start"() <{level = 10 : i32, message = "hqk,hkd->hqd"}> : () -> ()
      %cst_31 = arith.constant dense<0.000000e+00> : vector<4x8x8xf32>
      %61 = tpu.matmul %51, %26, %cst_31 {dimension_numbers = #tpu.dot_dimension_numbers<[2], [1], [1], [2], [0, 0, 0, 1, 1, 2], [0], [0]>} : vector<4x8x8xf32>, vector<4x8x8xf32>, vector<4x8x8xf32> -> vector<4x8x8xf32>
      "tpu.trace_stop"() : () -> ()
      %62 = arith.addf %60, %61 : vector<4x8x8xf32>
      %c0_32 = arith.constant 0 : index
      %c0_33 = arith.constant 0 : index
      %c0_34 = arith.constant 0 : index
      %63 = vector.load %arg13[%c0_32, %c0_33, %c0_34] : memref<4x8x8xf32, #tpu.memory_space<vmem>>, vector<4x8x8xf32>
      tpu.vector_store %arg13[%c0_32, %c0_33, %c0_34], %62 {strides = array<i32>} : memref<4x8x8xf32, #tpu.memory_space<vmem>>, vector<4x8x8xf32>,
      %c0_35 = arith.constant 0 : index
      %c0_36 = arith.constant 0 : index
      %c0_37 = arith.constant 0 : index
      %64 = vector.load %arg11[%c0_35, %c0_36, %c0_37] : memref<4x8x1xf32, #tpu.memory_space<vmem>>, vector<4x8x1xf32>
      tpu.vector_store %arg11[%c0_35, %c0_36, %c0_37], %46 {strides = array<i32>} : memref<4x8x1xf32, #tpu.memory_space<vmem>>, vector<4x8x1xf32>,
    } else {
    }
    %c0_i32_3 = arith.constant 0 : i32
    %9 = arith.cmpi eq, %arg2, %c0_i32_3 : i32
    %10 = arith.extui %9 : i1 to i32
    %c0_i32_4 = arith.constant 0 : i32
    %11 = arith.cmpi ne, %10, %c0_i32_4 : i32
    scf.if %11 {
      %c0 = arith.constant 0 : index
      %c0_5 = arith.constant 0 : index
      %c0_6 = arith.constant 0 : index
      %12 = vector.load %arg12[%c0, %c0_5, %c0_6] : memref<4x8x1xf32, #tpu.memory_space<vmem>>, vector<4x8x1xf32>
      %13 = tpu.reciprocal %12 {approx = true} : vector<4x8x1xf32> -> vector<4x8x1xf32>
      %c0_7 = arith.constant 0 : index
      %c0_8 = arith.constant 0 : index
      %c0_9 = arith.constant 0 : index
      %14 = vector.load %arg12[%c0_7, %c0_8, %c0_9] : memref<4x8x1xf32, #tpu.memory_space<vmem>>, vector<4x8x1xf32>
      %15 = arith.mulf %14, %13 : vector<4x8x1xf32>
      %cst = arith.constant 2.000000e+00 : f32
      %16 = vector.broadcast %cst : f32 to vector<4x8x1xf32>
      %17 = arith.subf %16, %15 : vector<4x8x1xf32>
      %18 = arith.mulf %13, %17 : vector<4x8x1xf32>
      %c0_10 = arith.constant 0 : index
      %c0_11 = arith.constant 0 : index
      %c0_12 = arith.constant 0 : index
      %19 = vector.load %arg13[%c0_10, %c0_11, %c0_12] : memref<4x8x8xf32, #tpu.memory_space<vmem>>, vector<4x8x8xf32>
      %20 = vector.broadcast %18 : vector<4x8x1xf32> to vector<4x8x8xf32>
      %21 = arith.mulf %19, %20 : vector<4x8x8xf32>
      %22 = tpu.transpose %21, [1, 0, 2] : vector<4x8x8xf32> -> vector<8x4x8xf32>
      %23 = vector.shape_cast %22 : vector<8x4x8xf32> to vector<8x32xf32>
      %c0_13 = arith.constant 0 : index
      %c0_14 = arith.constant 0 : index
      %24 = vector.load %arg7[%c0_13, %c0_14] : memref<32x32xf32, #tpu.memory_space<vmem>>, vector<32x32xf32>
      %cst_15 = arith.constant dense<0.000000e+00> : vector<8x32xf32>
      %25 = tpu.matmul %23, %24, %cst_15 {dimension_numbers = #tpu.dot_dimension_numbers<[1], [0], [0], [1], [0, 0, 1, 1], [], []>} : vector<8x32xf32>, vector<32x32xf32>, vector<8x32xf32> -> vector<8x32xf32>
      %c0_16 = arith.constant 0 : index
      %c0_17 = arith.constant 0 : index
      %26 = vector.load %arg8[%c0_16, %c0_17] : memref<1x32xf32, #tpu.memory_space<vmem>>, vector<1x32xf32>
      %27 = vector.shape_cast %26 : vector<1x32xf32> to vector<32xf32>
      %28 = vector.shape_cast %27 : vector<32xf32> to vector<1x32xf32>
      %29 = vector.broadcast %28 : vector<1x32xf32> to vector<8x32xf32>
      %30 = arith.addf %25, %29 : vector<8x32xf32>
      %c0_18 = arith.constant 0 : index
      %c0_19 = arith.constant 0 : index
      %c0_20 = arith.constant 0 : index
      %31 = vector.load %arg9[%c0_18, %c0_19, %c0_20] : memref<1x8x32xf32, #tpu.memory_space<vmem>>, vector<1x8x32xf32>
      %32 = vector.shape_cast %31 : vector<1x8x32xf32> to vector<8x32xf32>
      %33 = vector.shape_cast %30 : vector<8x32xf32> to vector<1x8x32xf32>
      tpu.vector_store %arg9[%c0_18, %c0_19, %c0_20], %33 {strides = array<i32>} : memref<1x8x32xf32, #tpu.memory_space<vmem>>, vector<1x8x32xf32>,
    } else {
    }
    return
  }
  func.func @transform_0(%arg0: i32, %arg1: i32, %arg2: i32) -> (i32, i32, i32) {
    %c0_i32 = arith.constant 0 : i32
    %c0_i32_0 = arith.constant 0 : i32
    return %arg0, %arg1, %c0_i32 : i32, i32, i32
  }
  func.func @transform_1(%arg0: i32, %arg1: i32, %arg2: i32) -> (i32, i32, i32) {
    %c0_i32 = arith.constant 0 : i32
    %c0_i32_0 = arith.constant 0 : i32
    return %arg0, %arg2, %c0_i32 : i32, i32, i32
  }
  func.func @transform_2(%arg0: i32, %arg1: i32, %arg2: i32) -> (i32, i32) {
    %c0_i32 = arith.constant 0 : i32
    %c0_i32_0 = arith.constant 0 : i32
    %c0_i32_1 = arith.constant 0 : i32
    return %c0_i32, %c0_i32_0 : i32, i32
  }
  func.func @transform_3(%arg0: i32, %arg1: i32, %arg2: i32) -> (i32, i32) {
    %c0_i32 = arith.constant 0 : i32
    %c0_i32_0 = arith.constant 0 : i32
    %c0_i32_1 = arith.constant 0 : i32
    return %c0_i32, %c0_i32_0 : i32, i32
  }
  func.func @transform_4(%arg0: i32, %arg1: i32, %arg2: i32) -> (i32, i32) {
    %c0_i32 = arith.constant 0 : i32
    %c0_i32_0 = arith.constant 0 : i32
    %c0_i32_1 = arith.constant 0 : i32
    return %c0_i32, %c0_i32_0 : i32, i32
  }
  func.func @transform_5(%arg0: i32, %arg1: i32, %arg2: i32) -> (i32, i32) {
    %c0_i32 = arith.constant 0 : i32
    %c0_i32_0 = arith.constant 0 : i32
    %c0_i32_1 = arith.constant 0 : i32
    return %c0_i32, %c0_i32_0 : i32, i32
  }
  func.func @transform_6(%arg0: i32, %arg1: i32, %arg2: i32) -> (i32, i32, i32) {
    %c0_i32 = arith.constant 0 : i32
    %c0_i32_0 = arith.constant 0 : i32
    return %arg0, %arg1, %c0_i32 : i32, i32, i32
  }
}

</mosaic_0001>

<bundles_post_ra>
// kernel: tpu_custom_call.1
= control target key start
LH: loop header
LB: loop body
LE: loop exit
PB: predicated region body
PF: predicated region fallthrough
CT: control target
= control target key end

     0   :  { %s3343_s0 = inlined_call_operand.hbm [shape: f32[2,8,32], index: 0, kind: input, shape index: {}]   ;;  %s3344_s1 = inlined_call_operand.hbm [shape: f32[2,8,32], index: 1, kind: input, shape index: {}]   ;;  %s3345_s2 = inlined_call_operand.hbm [shape: f32[32,96], index: 2, kind: input, shape index: {}]   ;;  %s3346_s3 = inlined_call_operand.vmem [shape: f32[1,96], index: 3, kind: input, shape index: {}]   ;;  %s3347_s4 = inlined_call_operand.hbm [shape: f32[32,32], index: 4, kind: input, shape index: {}]   ;;  %s3348_s5 = inlined_call_operand.vmem [shape: f32[1,32], index: 5, kind: input, shape index: {}]   ;;  %s3349_s6 = inlined_call_operand.hbm [shape: f32[2,8,32], index: 6, kind: output, shape index: {}]  }
   0x1   :  { %3356 = sst [smem:[#allocation23_spill]] %s3345_s2 }
   0x2   :  { %3357 = sst [smem:[#allocation24_spill]] %s3347_s4 }
   0x3   :  { %11 = vsyncpa [#allocation7], 0 }
   0x4   :  { %13 = vsyncpa [#allocation7 + $0x1], 0 }
   0x5   :  { %14 = vsyncpa [#allocation10], 0 }
   0x6   :  { %16 = vsyncpa [#allocation10 + $0x1], 0 }
   0x7   :  { %17 = vsyncpa [#allocation13], 0 }
   0x8   :  { %18 = vsyncpa [#allocation8], 0 }
   0x9   :  { %20 = vsyncpa [#allocation8 + $0x1], 0  ;;  %s2778_s21 = smov 0   ;;  %s2780_s22 = smov 0  }
   0xa   :  { %s2782_s23 = smov 0   ;;  %s2784_s24 = smov 0  }
   0xb   :  { %s2786_s25 = smov 0   ;;  %s2788_s26 = smov 0  }
   0xc LB: > { %3358 = sst [smem:[#allocation20_spill]] %s2716_s25  ;;  %s2809_s27 = sadd.s32 4294967295, %s2720_s26   ;;  %s2720_s26 = sphi %s2788_s26, %s26_s26   ;;  %s2716_s25 = sphi %s2786_s25, %s3381_s25   ;;  %s2712_s24 = sphi %s2784_s24, %s3380_s24   ;;  %s2708_s23 = sphi %s2782_s23, %s3384_s23   ;;  %s2704_s22 = sphi %s2780_s22, %s3383_s22   ;;  %s2700_s21 = sphi %s2778_s21, %s3382_s21  }
   0xd   : > { %s2203_s28 = sadd.s32 4294967294, %s2720_s26   ;;  %p67_p0 = scmp.ne.s32.totalorder %s2704_s22, %s2700_s21 }
   0xe   : > { %p3350_p1 = scmp.eq.s32.totalorder %s2809_s27, 0  ;;  %p211_p3 = scmp.eq.s32.totalorder %s2203_s28, 1 }
   0xf   : > { %p2204_p5 = scmp.ge.s32.totalorder %s2720_s26, 1  ;;  %p218_p7 = scmp.lt.s32.totalorder %s2720_s26, 3 }
  0x10   : > { %p2818_p4 = por %p3350_p1, %p67_p0  ;;  %p2823_p6 = por %p211_p3, %p67_p0 }
  0x11   : > { %p2828_p8 = pnand %p2204_p5, %p218_p7  ;;  %s2722_s8 = smov [#allocation11]  }
  0x12   : > { %s3359_s29 = scalar_select %p2818_p4, 1, 0 }
  0x13   : > { %s3360_s30 = scalar_select %p2823_p6, 1, 0 }
  0x14   : > { %s3361_s7 = scalar_select %p2828_p8, 1, 0 }
  0x15   : > { %s230_s9 = sshll.u32 %s2722_s8, 4  ;;  %p2384_p9 = pneg %p2828_p8  ;;  %s2832_s9 = int_to_ptr.vmem [resolvable:$true] %s230_s9 }
  0x16   : > { %s2723_s11 = smov [#allocation12]   ;;  %s3363_s2 = sld [smem:[#allocation23_spill]] }
  0x17   : > { %p2839_p11 = pnand %p2384_p9, %p3350_p1  ;;  %s246_s12 = sshll.u32 %s2723_s11, 4  ;;  %s2843_s12 = int_to_ptr.vmem [resolvable:$true] %s246_s12 }
  0x19   : > { %p2512_p13 = pneg %p2839_p11 }
  0x1c   : > { %s2510_s15 = scalar_lea.hbm %s3363_s2, 512 }
  0x1d   : > { %p2511_p12 = scmp.ne.s32.totalorder %s3363_s2, %s2510_s15  ;;  %p2517_p5 = scmp.lt.u32.totalorder %s2510_s15, %s3363_s2 }
  0x1f   : > { %p2513_p0 = pnand %p2512_p13, %p2511_p12 }
  0x21   : > { %p2514_p3 = pneg %p2513_p0 }
  0x23   : > { %p2519_p7 = pnand %p2517_p5, %p2514_p3 }
  0x25   : > { %2522 = shalt.err (!%p2519_p7)
}
  0x26   : > { %s2523_s20 = scalar_lea.vmem %s2832_s9, 512  ;;  %p2531_p2 = scmp.lt.s32.totalorder %s2832_s9, %s2832_s9 }
  0x27   : > { %p2524_p9 = scmp.ne.s32.totalorder %s2832_s9, %s2523_s20  ;;  %p2532_p12 = scmp.lt.s32.totalorder %s2523_s20, %s2523_s20 }
  0x29   : > { %p2526_p10 = pnand %p2524_p9, %p2512_p13  ;;  %p2533_p0 = por %p2532_p12, %p2531_p2 }
  0x2b   : > { %p2527_p1 = pneg %p2526_p10 }
  0x2d   : > { %p2534_p6 = pnand %p2533_p0, %p2527_p1 }
  0x2f   : > { %2537 = shalt.err (!%p2534_p6)
}
  0x30   : > { %s2724_s28 = smov 128   ;;  %s2725_s8 = smov 8  }
  0x31   : > { %2387 = dma.hbm_to_vmem [thread:$0]  (!%p2839_p11), %s3363_s2, 512, %s2832_s9, [#allocation10], %s2724_s28, %s2724_s28, %s2725_s8  }
  0x32   : > { %s3364_s4 = sld [smem:[#allocation24_spill]] }
  0x38   : > { %s2538_s16 = scalar_lea.hbm %s3364_s4, 512 }
  0x39   : > { %p2539_p2 = scmp.ne.s32.totalorder %s3364_s4, %s2538_s16  ;;  %p2545_p10 = scmp.lt.u32.totalorder %s2538_s16, %s3364_s4 }
  0x3b   : > { %p2541_p1 = pnand %p2539_p2, %p2512_p13 }
  0x3d   : > { %p2542_p6 = pneg %p2541_p1 }
  0x3f   : > { %p2547_p3 = pnand %p2545_p10, %p2542_p6 }
  0x41   : > { %2550 = shalt.err (!%p2547_p3)
}
  0x42   : > { %s2551_s9 = scalar_lea.vmem %s2843_s12, 512  ;;  %p2559_p12 = scmp.lt.s32.totalorder %s2843_s12, %s2843_s12 }
  0x43   : > { %p2552_p5 = scmp.ne.s32.totalorder %s2843_s12, %s2551_s9  ;;  %p2560_p0 = scmp.lt.s32.totalorder %s2551_s9, %s2551_s9 }
  0x45   : > { %p2554_p7 = pnand %p2552_p5, %p2512_p13  ;;  %p2561_p2 = por %p2560_p0, %p2559_p12 }
  0x47   : > { %p2555_p9 = pneg %p2554_p7 }
  0x49   : > { %p2562_p1 = pnand %p2561_p2, %p2555_p9 }
  0x4b   : > { %2565 = shalt.err (!%p2562_p1)
}
  0x4c   : > { %2390 = dma.hbm_to_vmem [thread:$0]  (!%p2839_p11), %s3364_s4, 512, %s2843_s12, [#allocation13], %s2724_s28, %s2724_s28, %s2725_s8  }
  0x4d   : > { %s45_s14 = sadd.s32 1, %s2716_s25  ;;  %s54_s15 = sadd.s32 1, %s2708_s23 }
  0x4e   : > { %p47_p13 = scmp.ge.s32.totalorder %s45_s14, 2  ;;  %p61_p6 = scmp.ne.s32.totalorder %s2708_s23, %s2704_s22 }
  0x4f   : > { %p62_p10 = scmp.eq.s32.totalorder %s2720_s26, 0  ;;  %p2404_p3 = scmp.lt.s32.totalorder %s2720_s26, 2 }
  0x50   : > { %s3386_s14 = smov (%p47_p13, %s45_s14), 0  ;;  %p3366_p7 = scmp.eq.s32.totalorder %s2809_s27, 1 }
  0x51   : > { %3365 = sst [smem:[#allocation21_spill]] %s3386_s14  ;;  %p63_p5 = por %p62_p10, %p61_p6 }
  0x52   : > { %p2907_p9 = por %p3366_p7, %p61_p6  ;;  %s49_s16 = ssub.s32 %s2716_s25, %s3386_s14 }
  0x53   : > { %s263_s17 = sand.u32 1, %s2708_s23   ;;  %p52_p12 = scmp.eq.s32.totalorder %s49_s16, 0 }
  0x54   : > { %s3367_s10 = scalar_select %p2907_p9, 1, 0 }
  0x55   : > { %s2914_s12 = sshll.u32 %s263_s17, 3  ;;  %s2209_s28 = sshll.u32 %s2716_s25, 7 }
  0x56   : > { %s2918_s8 = scalar_select %p52_p12, %s2708_s23, %s54_s15  }
  0x57   : > { %s2923_s20 = scalar_lea.hbm %s3343_s0, %s2209_s28  ;;  %s267_s9 = scalar_lea.vmem [#allocation6], %s2914_s12 }
  0x58   : > { %3368 = sst [smem:[#allocation22_spill]] %s2918_s8  ;;  %s275_s11 = sshll.u32 %s267_s9, 4  ;;  %s2932_s11 = int_to_ptr.vmem [resolvable:$true] %s275_s11 }
  0x59   : > { %p2928_p11 = pnand %p2404_p3, %p63_p5  ;;  %s2937_s18 = scalar_lea.hbm %s3344_s1, %s2209_s28 }
  0x5a   : > { %s264_s19 = scalar_lea.sflag [#allocation7], %s263_s17  ;;  %s2566_s2 = scalar_lea.hbm %s2923_s20, 128 }
  0x5b   : > { %p2567_p0 = scmp.ne.s32.totalorder %s2923_s20, %s2566_s2  ;;  %p2568_p2 = pneg %p2928_p11 }
  0x5c   : > { %s2571_s14 = scalar_lea.hbm %s3343_s0, 256  ;;  %p2572_p6 = scmp.lt.u32.totalorder %s2923_s20, %s3343_s0 }
  0x5d   : > { %p2569_p1 = pnand %p2568_p2, %p2567_p0  ;;  %p2573_p10 = scmp.lt.u32.totalorder %s2571_s14, %s2566_s2 }
  0x5e   : > { %p2575_p5 = scmp.lt.u32.totalorder %s2566_s2, %s2923_s20 }
  0x5f   : > { %p2570_p13 = pneg %p2569_p1  ;;  %p2574_p3 = por %p2573_p10, %p2572_p6 }
  0x61   : > { %p2576_p7 = por %p2575_p5, %p2574_p3 }
  0x63   : > { %p2577_p12 = pnand %p2576_p7, %p2570_p13 }
  0x65   : > { %2580 = shalt.err (!%p2577_p12)
}
  0x66   : > { %s2581_s17 = scalar_lea.vmem %s2932_s11, 128  ;;  %s2726_s4 = smov [#allocation6]  }
  0x67   : > { %p2582_p0 = scmp.ne.s32.totalorder %s2932_s11, %s2581_s17  ;;  %s2586_s28 = sshll.u32 %s2726_s4, 4  ;;  %s2587_s28 = int_to_ptr.vmem [resolvable:$false] %s2586_s28 }
  0x68   : > { %s2588_s25 = scalar_lea.vmem %s2587_s28, 256  ;;  %p2589_p4 = scmp.lt.s32.totalorder %s2932_s11, %s2587_s28 }
  0x69   : > { %p2584_p1 = pnand %p2582_p0, %p2568_p2  ;;  %p2590_p6 = scmp.lt.s32.totalorder %s2588_s25, %s2581_s17 }
  0x6b   : > { %p2585_p9 = pneg %p2584_p1  ;;  %p2591_p10 = por %p2590_p6, %p2589_p4 }
  0x6d   : > { %p2592_p3 = pnand %p2591_p10, %p2585_p9 }
  0x6f   : > { %2595 = shalt.err (!%p2592_p3)
}
  0x70   : > { %2394 = dma.hbm_to_vmem [thread:$0]  (!%p2928_p11), %s2923_s20, 128, %s2932_s11, %s264_s19  }
  0x71   : > { %s282_s2 = sand.u32 1, %s2720_s26   ;;  %s286_s14 = scalar_lea.vmem [#allocation9], %s2914_s12 }
  0x72   : > { %s294_s8 = sshll.u32 %s286_s14, 4  ;;  %s283_s15 = scalar_lea.sflag [#allocation10], %s282_s2  ;;  %s295_s8 = int_to_ptr.vmem [resolvable:$true] %s294_s8 }
  0x73   : > { %s2596_s16 = scalar_lea.hbm %s2937_s18, 128  ;;  %s2601_s4 = scalar_lea.hbm %s3344_s1, 256 }
  0x74   : > { %p2597_p4 = scmp.ne.s32.totalorder %s2937_s18, %s2596_s16  ;;  %p2602_p5 = scmp.lt.u32.totalorder %s2937_s18, %s3344_s1 }
  0x75   : > { %p2603_p7 = scmp.lt.u32.totalorder %s2601_s4, %s2596_s16  ;;  %p2605_p0 = scmp.lt.u32.totalorder %s2596_s16, %s2937_s18 }
  0x76   : > { %p2599_p9 = pnand %p2597_p4, %p2568_p2 }
  0x77   : > { %p2604_p12 = por %p2603_p7, %p2602_p5 }
  0x78   : > { %p2600_p13 = pneg %p2599_p9 }
  0x79   : > { %p2606_p1 = por %p2605_p0, %p2604_p12 }
  0x7b   : > { %p2607_p6 = pnand %p2606_p1, %p2600_p13 }
  0x7d   : > { %2610 = shalt.err (!%p2607_p6)
}
  0x7e   : > { %s2611_s12 = scalar_lea.vmem %s295_s8, 128  ;;  %s2727_s20 = smov [#allocation9]  }
  0x7f   : > { %p2612_p10 = scmp.ne.s32.totalorder %s295_s8, %s2611_s12  ;;  %s2616_s11 = sshll.u32 %s2727_s20, 4  ;;  %s2617_s11 = int_to_ptr.vmem [resolvable:$false] %s2616_s11 }
  0x80   : > { %s2618_s19 = scalar_lea.vmem %s2617_s11, 256  ;;  %p2619_p9 = scmp.lt.s32.totalorder %s295_s8, %s2617_s11 }
  0x81   : > { %p2614_p3 = pnand %p2612_p10, %p2568_p2  ;;  %p2620_p8 = scmp.lt.s32.totalorder %s2618_s19, %s2611_s12 }
  0x83   : > { %p2615_p4 = pneg %p2614_p3  ;;  %p2621_p5 = por %p2620_p8, %p2619_p9 }
  0x85   : > { %p2622_p7 = pnand %p2621_p5, %p2615_p4 }
  0x87   : > { %2625 = shalt.err (!%p2622_p7)
}
  0x88   : > { %2397 = dma.hbm_to_vmem [thread:$0]  (!%p2928_p11), %s2937_s18, 128, %s295_s8, %s283_s15  }
  0x89   : > { %p3370_p13 = scmp.ne.s32.totalorder %s3361_s7, 0 }
  0x8a   : > { %s2988_s2 = sand.u32 (!%p3370_p13), 1, %s2704_s22   ;;  %p3371_p8 = scmp.ne.s32.totalorder (!%p3370_p13), %s3359_s29, 0 }
  0x8b   : > { %303 = sbr.rel (%p3370_p13) target bundleno = 1825 (0x721), region = 44  ;;  %s2991_s14 = sshll.u32 (!%p3370_p13), %s2988_s2, 3 }
  0x8c   : > { %s306_s16 = scalar_lea.sflag (!%p3370_p13), [#allocation7], %s2988_s2  ;;  %s309_s9 = scalar_lea.vmem (!%p3370_p13), [#allocation6], %s2991_s14 }
  0x92   : > { %2679 = dma.done.wait (%p3371_p8), %s306_s16, 128  }
  0x93   : > { %2681 = vsyncadd (%p3371_p8), %s306_s16, 4294967168  ;;  %s314_s7 = sand.u32 1, %s2809_s27   ;;  %s318_s18 = scalar_lea.vmem [#allocation9], %s2991_s14 }
  0x94   : > { %s315_s13 = scalar_lea.sflag [#allocation10], %s314_s7 }
  0x95   : > { %2683 = dma.done.wait (%p3371_p8), %s315_s13, 128  }
  0x96   : > { %2685 = vsyncadd (%p3371_p8), %s315_s13, 4294967168  ;;  %p3372_p11 = scmp.eq.s32.totalorder %s2809_s27, 0 }
  0x98   : > { %2687 = dma.done.wait (%p3372_p11), [#allocation10], 512   ;;  %p3373_p2 = pmov %p3372_p11 }
  0x9a   : > { %2689 = vsyncadd (%p3373_p2), [#allocation10], 4294966784  ;;  %p3374_p12 = pmov %p3373_p2 }
  0x9b   : > { %p3375_p0 = pmov %p3373_p2 }
  0x9c   : > { %2691 = dma.done.wait (%p3374_p12), [#allocation13], 512  }
  0x9d   : > { %2693 = vsyncadd (%p3375_p0), [#allocation13], 4294966784  ;;  %v2728_v0 = vmov 0.0|0.0   ;;  %vm2729_vm0 = vmmov 0   ;;  %v2730_v1 = vmov 0.0   ;;  %v623_v2 = vld [vmem:[#allocation11] sm:$0xff]  ;;  %v466_v28 = vlaneseq }
  0x9e   : > { %2352 = vmatprep.subr.bf16.mxu0 %v2728_v0  ;;  %2287 = vmatprep.mubr.msk.f32.mxu0 %vm2729_vm0, %v2730_v1  ;;  %v624_v3 = vld [vmem:[#allocation11 + $0x8] sm:$0xff]  ;;  %v625_v4 = vld [vmem:[#allocation11 + $0x10] sm:$0xff]  ;;  %v626_v7 = vld [vmem:[#allocation11 + $0x18] sm:$0xff]  ;;  %s2731_s8 = smov 96   ;;  %vm376_vm1 = vcmask 261120   ;;  %vm597_vm2 = vcmask 64512  }
  0x9f   : > { %2358 = vmatprep.subr.bf16.mxu1 %v2728_v0  ;;  %2298 = vmatprep.mubr.msk.f32.mxu1 %vm2729_vm0, %v2730_v1  ;;  %v2474_v5 = vpack.i.bf16 %v624_v3, %v623_v2  ;;  %v2353_v6 = vpack.c.bf16 %v624_v3, %v623_v2  ;;  %v2218_v8 = vld [vmem:[%s3346_s3] ss:$0 sm:$0xff]  ;;  %v2479_v9 = vpack.i.bf16 %v626_v7, %v625_v4  ;;  %v622_v20 = vld [vmem:[%s318_s18] sm:$0xff]  ;;  %s2732_s15 = smov 112   ;;  %s2733_s17 = smov 120   ;;  %v3048_v33 = vshrl.u32 %v466_v28, 7 }
  0xa0   : > { %v2356_v10 = vpack.c.bf16 %v626_v7, %v625_v4  ;;  %649 = vrot.lane.b32.xlu1 %v2218_v8, %s2731_s8  ;;  %v364_v11 = vld [vmem:[%s309_s9] sm:$0xff]  ;;  %611 = vst.msk [vmem:[#allocation5] sm:$0xff] %vm597_vm2, %v2730_v1  ;;  %612 = vst.msk [vmem:[#allocation5 + $0x8] sm:$0xff] %vm597_vm2, %v2730_v1  ;;  %s2734_s4 = smov 104   ;;  %v2735_v26 = vmov 1983009808  }
  0xa1   : > { %2475 = vrot.lane.b32.xlu0 %v2474_v5, %s2731_s8  ;;  %2354 = vmatpush3.bf16.msra.mxu0 %v2353_v6  ;;  %613 = vst.msk [vmem:[#allocation5 + $0x10] sm:$0xff] %vm597_vm2, %v2730_v1  ;;  %614 = vst.msk [vmem:[#allocation5 + $0x18] sm:$0xff] %vm597_vm2, %v2730_v1  ;;  %v464_v27 = vunpack.c.l.s4 %v2735_v26  ;;  %v2736_v29 = vmov 1934713408   ;;  %vm602_vm3 = vcmask 7168   ;;  %s2739_s28 = smov 16  }
  0xa2   : > { %2355 = vmatprep.subr.bf16.mxu0 %v2728_v0  ;;  %v496_v30 = vunpack.c.l.s4 %v2736_v29  ;;  %607 = vst.msk [vmem:[#allocation4] sm:$0xff] %vm602_vm3, %v2730_v1  ;;  %608 = vst.msk [vmem:[#allocation4 + $0x8] sm:$0xff] %vm602_vm3, %v2730_v1  ;;  %s2740_s25 = smov 8   ;;  %s2741_s12 = smov 24   ;;  %vm1971_vm5 = vcmask 130048   ;;  %vm1973_vm6 = vcmask 195584  }
  0xa3   : > { %v465_v32 = vunpack.c.0.s8 %v464_v27  ;;  %609 = vst.msk [vmem:[#allocation4 + $0x10] sm:$0xff] %vm602_vm3, %v2730_v1  ;;  %610 = vst.msk [vmem:[#allocation4 + $0x18] sm:$0xff] %vm602_vm3, %v2730_v1  ;;  %s2245_s19 = sshll.u32 %s2712_s24, 7  ;;  %s359_s16 = scalar_lea.vmem [#allocation14], %s2991_s14 }
  0xa4   : > { %v497_v38 = vunpack.c.0.s8 %v496_v30  ;;  %s2076_s9 = sshll.u32 %s359_s16, 4  ;;  %s3293_s18 = scalar_lea.hbm %s3349_s6, %s2245_s19  ;;  %s3295_s9 = int_to_ptr.vmem [resolvable:$true] %s2076_s9 }
  0xa5   : > { %2480 = vrot.lane.b32.xlu0 %v2479_v9, %s2731_s8  ;;  %2357 = vmatpush3.bf16.msra.mxu0 %v2356_v10  ;;  %v3055_v39 = vsub.s32 %v465_v32, %v3048_v33  ;;  %s2062_s27 = scalar_lea.sflag [#allocation8], %s2988_s2  ;;  %s2626_s29 = scalar_lea.vmem %s3295_s9, 128 }
  0xa6   : > { %2311 = vmatprep.subr.mxu0 %v2730_v1  ;;  %v3058_v45 = vsub.s32 %v497_v38, %v3048_v33  ;;  %p2627_p1 = scmp.ne.s32.totalorder %s3295_s9, %s2626_s29  ;;  %p3376_p6 = scmp.ne.s32.totalorder %s3367_s10, 0 }
  0xa7   : > { %s2742_s24 = smov [#allocation14]  }
  0xa8   : > { %2288 = vmatmul.mubr.msk.f32.vlgmr.msra.gmra.mrb[0].mxu0 %vm376_vm1, %v364_v11  ;;  %p2628_p10 = pnand %p2627_p1, %p3376_p6  ;;  %s2630_s14 = sshll.u32 %s2742_s24, 4  ;;  %s2631_s14 = int_to_ptr.vmem [resolvable:$false] %s2630_s14 }
  0xa9   : > { %2313 = vmatprep.mubr.msk.f32.mxu0 %vm2729_vm0, %v2730_v1  ;;  %p2633_p4 = scmp.lt.s32.totalorder %s3295_s9, %s2631_s14 }
  0xaa   : > { %p2629_p3 = pneg %p2628_p10 }
 0x112   : > { %v650_v25 = vpop.permute.xlu1 %649 }
 0x113   : > { %v2476_v12 = vpop.permute.xlu0 %2475 }
 0x114   : > { %v2478_v13 = vunpack.i.h.bf16 %v2476_v12  ;;  %v2477_v14 = vunpack.i.l.bf16 %v2476_v12 }
 0x116   : > { %v2359_v15 = vpack.c.bf16 %v2478_v13, %v2477_v14 }
 0x117   : > { %v2481_v16 = vpop.permute.xlu0 %2480 }
 0x118   : > { %v2483_v17 = vunpack.i.h.bf16 %v2481_v16  ;;  %v2482_v18 = vunpack.i.l.bf16 %v2481_v16  ;;  %2360 = vmatpush3.bf16.msra.mxu1 %v2359_v15 }
 0x119   : > { %2361 = vmatprep.subr.bf16.mxu1 %v2728_v0 }
 0x11a   : > { %v2362_v19 = vpack.c.bf16 %v2483_v17, %v2482_v18 }
 0x11c   : > { %2363 = vmatpush3.bf16.msra.mxu1 %v2362_v19 }
 0x11d   : > { %2301 = vmatprep.subr.mxu1 %v2730_v1 }
 0x11f   : > { %2299 = vmatmul.mubr.msk.f32.vlgmr.msra.gmra.mrb[0].mxu1 %vm376_vm1, %v622_v20 }
 0x120   : > { %2303 = vmatprep.mubr.msk.f32.mxu1 %vm2729_vm0, %v2730_v1 }
 0x17b   : > { %v446_v21 = vpop.f32.mrb[0].mxu0 }
 0x17c   : > { %v447_v22 = vadd.f32 %v2218_v8, %v446_v21  ;;  %v2289_v23 = vpop.f32.mrb[1].mxu0 }
 0x17e   : > { %v450_v24 = vmul.f32 0.35355338, %v447_v22 }
 0x180   : > { %455 = vrot.lane.b32.xlu0 %v450_v24, %s2732_s15  ;;  %452 = vrot.lane.b32.xlu1 %v450_v24, %s2733_s17 }
 0x184   : > { %458 = vrot.lane.b32.xlu1 %v450_v24, %s2734_s4 }
 0x1f2   : > { %v722_v31 = vpop.f32.mrb[0].mxu1  ;;  %v456_v34 = vpop.permute.xlu0 %455 }
 0x1f3   : > { %v3050_v35 = vadd.f32 %v722_v31, %v650_v25  ;;  %v453_v36 = vpop.permute.xlu1 %452  ;;  %v2300_v37 = vpop.f32.mrb[1].mxu1  ;;  %v461_v40 = vcombine.low %v450_v24, %v456_v34  ;;  %v462_v41 = vcombine.high %v450_v24, %v456_v34 }
 0x1f5   : > { %727 = vrot.lane.b32.xlu0 %v3050_v35, %s2733_s17  ;;  %730 = vrot.lane.b32.xlu1 %v3050_v35, %s2732_s15  ;;  %v469_v46 = vrot.slane %v461_v40, %v3055_v39  ;;  %v476_v47 = vrot.slane %v462_v41, %v3055_v39 }
 0x1f7   : > { %v459_v42 = vpop.permute.xlu1 %458 }
 0x1f8   : > { %v477_v43 = vcombine.low %v453_v36, %v459_v42  ;;  %v478_v44 = vcombine.high %v453_v36, %v459_v42 }
 0x1f9   : > { %733 = vrot.lane.b32.xlu0 %v3050_v35, %s2734_s4 }
 0x1fa   : > { %v485_v48 = vrot.slane %v477_v43, %v3055_v39  ;;  %v492_v49 = vrot.slane %v478_v44, %v3055_v39 }
 0x1fc   : > { %v493_v50 = vcombine.low %v469_v46, %v485_v48  ;;  %v494_v51 = vcombine.high %v469_v46, %v485_v48  ;;  %v509_v52 = vcombine.low %v476_v47, %v492_v49  ;;  %v510_v53 = vcombine.high %v476_v47, %v492_v49 }
 0x1fe   : > { %v501_v54 = vrot.slane %v493_v50, %v3058_v45  ;;  %v508_v55 = vrot.slane %v494_v51, %v3058_v45  ;;  %v517_v56 = vrot.slane %v509_v52, %v3058_v45  ;;  %v524_v57 = vrot.slane %v510_v53, %v3058_v45 }
 0x200   : > { %v529_v58 = vcombine.low %v501_v54, %v508_v55  ;;  %v2220_v59 = vcombine.high %v501_v54, %v508_v55  ;;  %v545_v60 = vcombine.low %v517_v56, %v524_v57  ;;  %v2221_v61 = vcombine.high %v517_v56, %v524_v57 }
 0x202   : > { %v536_v62 = vrot.slane %v529_v58, %v3055_v39  ;;  %v544_v63 = vrot.slane %v2220_v59, %v3055_v39  ;;  %v552_v2 = vrot.slane %v545_v60, %v3055_v39  ;;  %v560_v3 = vrot.slane %v2221_v61, %v3055_v39 }
 0x204   : > { %v561_v4 = vcombine.low %v536_v62, %v544_v63  ;;  %v562_v5 = vcombine.high %v536_v62, %v544_v63  ;;  %v577_v6 = vcombine.low %v552_v2, %v560_v3  ;;  %v578_v7 = vcombine.high %v552_v2, %v560_v3 }
 0x205   : > { %v2737_v2 = vmov -1e+30   ;;  %v1335_v3 = vand.u32 127, %v466_v28 }
 0x206   : > { %v569_v8 = vrot.slane %v561_v4, %v3058_v45  ;;  %v576_v9 = vrot.slane %v562_v5, %v3058_v45  ;;  %v585_v10 = vrot.slane %v577_v6, %v3058_v45  ;;  %v592_v11 = vrot.slane %v578_v7, %v3058_v45  ;;  %603 = vst.msk [vmem:[#allocation3] sm:$0xff] %vm602_vm3, %v2737_v2 }
 0x207   : > { %604 = vst.msk [vmem:[#allocation3 + $0x8] sm:$0xff] %vm602_vm3, %v2737_v2  ;;  %605 = vst.msk [vmem:[#allocation3 + $0x10] sm:$0xff] %vm602_vm3, %v2737_v2  ;;  %vm1338_vm4 = vcmp.ge.s32.totalorder %v3048_v33, %v1335_v3 }
 0x208   : > { %v593_v12 = vcombine.low %v569_v8, %v585_v10  ;;  %v594_v13 = vcombine.high %v569_v8, %v585_v10  ;;  %v595_v14 = vcombine.low %v576_v9, %v592_v11  ;;  %v596_v15 = vcombine.high %v576_v9, %v592_v11  ;;  %606 = vst.msk [vmem:[#allocation3 + $0x18] sm:$0xff] %vm602_vm3, %v2737_v2 }
 0x20a   : > { %598 = vst.msk [vmem:[#allocation2] sm:$0xff] %vm597_vm2, %v593_v12  ;;  %599 = vst.msk [vmem:[#allocation2 + $0x8] sm:$0xff] %vm597_vm2, %v594_v13 }
 0x20b   : > { %600 = vst.msk [vmem:[#allocation2 + $0x10] sm:$0xff] %vm597_vm2, %v595_v14  ;;  %601 = vst.msk [vmem:[#allocation2 + $0x18] sm:$0xff] %vm597_vm2, %v596_v15 }
 0x211   : > { %v1020_v58 = vld [vmem:[#allocation2] sm:$0xff]  ;;  %v1021_v61 = vld [vmem:[#allocation2 + $0x8] sm:$0xff] }
 0x212   : > { %v1022_v59 = vld [vmem:[#allocation2 + $0x10] sm:$0xff]  ;;  %v1023_v63 = vld [vmem:[#allocation2 + $0x18] sm:$0xff] }
 0x267   : > { %v3081_v16 = vpop.permute.xlu0 %727  ;;  %v3083_v17 = vpop.permute.xlu1 %730 }
 0x268   : > { %v736_v18 = vcombine.low %v3050_v35, %v3083_v17  ;;  %v737_v19 = vcombine.high %v3050_v35, %v3083_v17 }
 0x26a   : > { %v744_v23 = vrot.slane %v736_v18, %v3055_v39  ;;  %v751_v24 = vrot.slane %v737_v19, %v3055_v39 }
 0x26b   : > { %v3089_v20 = vpop.permute.xlu0 %733 }
 0x26c   : > { %v752_v21 = vcombine.low %v3081_v16, %v3089_v20  ;;  %v753_v22 = vcombine.high %v3081_v16, %v3089_v20 }
 0x26e   : > { %v760_v25 = vrot.slane %v752_v21, %v3055_v39  ;;  %v767_v26 = vrot.slane %v753_v22, %v3055_v39  ;;  %v2738_v21 = vmov 0   ;;  %v3169_v22 = vld [vmem:[#allocation3] sm:$0xff] }
 0x26f   : > { %2484 = vset.pattern.permute.xlu0 %v2738_v21  ;;  %2485 = vset.pattern.permute.xlu1 %v2738_v21 }
 0x270   : > { %v768_v27 = vcombine.low %v744_v23, %v760_v25  ;;  %v769_v29 = vcombine.high %v744_v23, %v760_v25  ;;  %v784_v30 = vcombine.low %v751_v24, %v767_v26  ;;  %v785_v31 = vcombine.high %v751_v24, %v767_v26  ;;  %v3174_v25 = vld [vmem:[#allocation3 + $0x8] sm:$0xff]  ;;  %v3186_v26 = vld [vmem:[#allocation3 + $0x10] sm:$0xff] }
 0x272   : > { %v776_v32 = vrot.slane %v768_v27, %v3058_v45  ;;  %v783_v34 = vrot.slane %v769_v29, %v3058_v45  ;;  %v792_v36 = vrot.slane %v784_v30, %v3058_v45  ;;  %v799_v37 = vrot.slane %v785_v31, %v3058_v45 }
 0x274   : > { %v804_v38 = vcombine.low %v776_v32, %v783_v34  ;;  %v2224_v40 = vcombine.high %v776_v32, %v783_v34  ;;  %v820_v41 = vcombine.low %v792_v36, %v799_v37  ;;  %v2225_v42 = vcombine.high %v792_v36, %v799_v37 }
 0x276   : > { %v811_v43 = vrot.slane %v804_v38, %v3055_v39  ;;  %v819_v44 = vrot.slane %v2224_v40, %v3055_v39  ;;  %v827_v46 = vrot.slane %v820_v41, %v3055_v39  ;;  %v835_v47 = vrot.slane %v2225_v42, %v3055_v39 }
 0x278   : > { %v836_v48 = vcombine.low %v811_v43, %v819_v44  ;;  %v837_v49 = vcombine.high %v811_v43, %v819_v44  ;;  %v852_v50 = vcombine.low %v827_v46, %v835_v47  ;;  %v853_v51 = vcombine.high %v827_v46, %v835_v47 }
 0x27a   : > { %v844_v52 = vrot.slane %v836_v48, %v3058_v45  ;;  %v860_v53 = vrot.slane %v852_v50, %v3058_v45  ;;  %v851_v54 = vrot.slane %v837_v49, %v3058_v45  ;;  %v867_v55 = vrot.slane %v853_v51, %v3058_v45 }
 0x27c   : > { %v868_v56 = vcombine.low %v844_v52, %v860_v53  ;;  %v870_v57 = vcombine.low %v851_v54, %v867_v55  ;;  %v869_v60 = vcombine.high %v844_v52, %v860_v53  ;;  %v871_v62 = vcombine.high %v851_v54, %v867_v55 }
 0x27e   : > { %2302 = vmatpush3.xpose.msk.msra.mxu1 %vm597_vm2, %v868_v56  ;;  %2312 = vmatpush3.xpose.msk.msra.mxu0 %vm597_vm2, %v870_v57 }
 0x27f   : > { %2306 = vmatprep.subr.mxu1 %v2730_v1  ;;  %2321 = vmatprep.subr.mxu0 %v2730_v1 }
 0x281   : > { %2304 = vmatmul.mubr.msk.f32.vlgmr.msra.gmra.mrb[2].mxu1 %vm597_vm2, %v1020_v58  ;;  %2314 = vmatmul.mubr.msk.f32.vlgmr.msra.gmra.mrb[2].mxu0 %vm597_vm2, %v1022_v59 }
 0x282   : > { %2307 = vmatpush3.xpose.msk.msra.mxu1 %vm597_vm2, %v869_v60  ;;  %2308 = vmatprep.mubr.msk.f32.mxu1 %vm2729_vm0, %v2730_v1 }
 0x283   : > { %2316 = vmatprep.subr.mxu1 %v2730_v1  ;;  %2323 = vmatprep.mubr.msk.f32.mxu0 %vm2729_vm0, %v2730_v1 }
 0x285   : > { %2309 = vmatmul.mubr.msk.f32.vlgmr.msra.gmra.mrb[4].mxu1 %vm597_vm2, %v1021_v61 }
 0x286   : > { %2317 = vmatpush3.xpose.msk.msra.mxu1 %vm597_vm2, %v871_v62  ;;  %2318 = vmatprep.mubr.msk.f32.mxu1 %vm2729_vm0, %v2730_v1 }
 0x287   : > { %2326 = vmatprep.subr.mxu1 %v2730_v1 }
 0x289   : > { %2319 = vmatmul.mubr.msk.f32.vlgmr.msra.gmra.mrb[6].mxu1 %vm597_vm2, %v1023_v63 }
 0x28a   : > { %2328 = vmatprep.mubr.msk.f32.mxu1 %vm2729_vm0, %v2730_v1 }
 0x354   : > { %v1097_v4 = vpop.f32.mrb[2].mxu1  ;;  %v1249_v5 = vpop.f32.mrb[2].mxu0 }
 0x355   : > { %v3145_v6 = vsel %vm1338_vm4, %v1097_v4, -1e+30  ;;  %v2305_v7 = vpop.f32.mrb[3].mxu1  ;;  %v2315_v8 = vpop.f32.mrb[3].mxu0  ;;  %v3153_v28 = vsel %vm1338_vm4, %v1249_v5, -1e+30 }
 0x356   : > { %v1349_v9 = vsel %vm597_vm2, %v3145_v6, -inf  ;;  %v1355_v19 = vsel %vm597_vm2, %v3153_v28, -inf }
 0x357   : > { %1350 = vmax.xlane.f32.xlu1 %v1349_v9 }
 0x358   : > { %v1173_v10 = vpop.f32.mrb[4].mxu1 }
 0x359   : > { %v3149_v11 = vsel %vm1338_vm4, %v1173_v10, -1e+30  ;;  %v2310_v12 = vpop.f32.mrb[5].mxu1 }
 0x35a   : > { %v1352_v13 = vsel %vm597_vm2, %v3149_v11, -inf }
 0x35b   : > { %1353 = vmax.xlane.f32.xlu0 %v1352_v13 }
 0x35c   : > { %v1325_v33 = vpop.f32.mrb[6].mxu1 }
 0x35d   : > { %v3155_v14 = vsel %vm1338_vm4, %v1325_v33, -1e+30  ;;  %v2320_v15 = vpop.f32.mrb[7].mxu1 }
 0x35e   : > { %v1358_v18 = vsel %vm597_vm2, %v3155_v14, -inf }
 0x35f   : > { %1359 = vmax.xlane.f32.xlu1 %v1358_v18  ;;  %1356 = vmax.xlane.f32.xlu0 %v1355_v19 }
 0x370   : > { %872 = vrot.lane.b32.xlu1 %v3050_v35, %s2731_s8 }
 0x374   : > { %874 = vrot.lane.b32.xlu1 %v3081_v16, %s2731_s8 }
 0x378   : > { %876 = vrot.lane.b32.xlu1 %v3083_v17, %s2731_s8 }
 0x37c   : > { %878 = vrot.lane.b32.xlu1 %v3089_v20, %s2731_s8  ;;  %v3184_v20 = vld [vmem:[#allocation3 + $0x18] sm:$0xff]  ;;  %s2632_s8 = scalar_lea.vmem %s2631_s14, 256 }
 0x37d   : > { %p2634_p9 = scmp.lt.s32.totalorder %s2632_s8, %s2626_s29 }
 0x37f   : > { %p2635_p5 = por %p2634_p9, %p2633_p4 }
 0x381   : > { %p2636_p7 = pnand %p2635_p5, %p2629_p3 }
 0x3e4   : > { %v1351_v23 = vpop.xlane.xlu1 %1350 }
 0x3e5   : > { %v3172_v24 = vmax.f32 %v3169_v22, %v1351_v23 }
 0x3e7   : > { %v1365_v35 = vsub.f32 %v3169_v22, %v3172_v24  ;;  %1766 = vst.msk [vmem:[#allocation3] sm:$0xff] %vm602_vm3, %v3172_v24  ;;  %1379 = vperm.xlu0 %2484, %v3172_v24   ;;  %v1410_v24 = vld [vmem:[#allocation4 + $0x8] sm:$0xff] }
 0x3e8   : > { %v1354_v16 = vpop.xlane.xlu0 %1353 }
 0x3e9   : > { %v3182_v17 = vmax.f32 %v3174_v25, %v1354_v16 }
 0x3eb   : > { %v1366_v27 = vsub.f32 %v3174_v25, %v3182_v17  ;;  %1767 = vst.msk [vmem:[#allocation3 + $0x8] sm:$0xff] %vm602_vm3, %v3182_v17 }
 0x3ec   : > { %v1360_v29 = vpop.xlane.xlu1 %1359  ;;  %v1357_v30 = vpop.xlane.xlu0 %1356 }
 0x3ed   : > { %v3193_v31 = vmax.f32 %v3184_v20, %v1360_v29  ;;  %v3196_v32 = vmax.f32 %v3186_v26, %v1357_v30 }
 0x3ef   : > { %v1368_v34 = vsub.f32 %v3184_v20, %v3193_v31  ;;  %1769 = vst.msk [vmem:[#allocation3 + $0x18] sm:$0xff] %vm602_vm3, %v3193_v31  ;;  %v1367_v36 = vsub.f32 %v3186_v26, %v3196_v32  ;;  %1768 = vst.msk [vmem:[#allocation3 + $0x10] sm:$0xff] %vm602_vm3, %v3196_v32  ;;  %1389 = vperm.xlu1 %2485, %v3196_v32   ;;  %v1409_v26 = vld [vmem:[#allocation4] sm:$0xff] }
 0x3f0   : > { %v873_v37 = vpop.permute.xlu1 %872 }
 0x3f3   : > { %1384 = vperm.xlu1 %2485, %v3182_v17  }
 0x3f4   : > { %v875_v38 = vpop.permute.xlu1 %874 }
 0x3f7   : > { %1394 = vperm.xlu1 %2485, %v3193_v31   ;;  %v1412_v31 = vld [vmem:[#allocation4 + $0x18] sm:$0xff] }
 0x3f8   : > { %v877_v40 = vpop.permute.xlu1 %876 }
 0x3f9   : > { %v884_v41 = vcombine.low %v873_v37, %v877_v40  ;;  %v885_v42 = vcombine.high %v873_v37, %v877_v40 }
 0x3fb   : > { %v892_v47 = vrot.slane %v884_v41, %v3055_v39  ;;  %v899_v48 = vrot.slane %v885_v42, %v3055_v39 }
 0x3fc   : > { %v879_v43 = vpop.permute.xlu1 %878 }
 0x3fd   : > { %v900_v44 = vcombine.low %v875_v38, %v879_v43  ;;  %v901_v46 = vcombine.high %v875_v38, %v879_v43 }
 0x3ff   : > { %v908_v49 = vrot.slane %v900_v44, %v3055_v39  ;;  %v915_v50 = vrot.slane %v901_v46, %v3055_v39 }
 0x401   : > { %v916_v51 = vcombine.low %v892_v47, %v908_v49  ;;  %v917_v52 = vcombine.high %v892_v47, %v908_v49  ;;  %v932_v53 = vcombine.low %v899_v48, %v915_v50  ;;  %v933_v54 = vcombine.high %v899_v48, %v915_v50 }
 0x403   : > { %v924_v55 = vrot.slane %v916_v51, %v3058_v45  ;;  %v931_v56 = vrot.slane %v917_v52, %v3058_v45  ;;  %v940_v57 = vrot.slane %v932_v53, %v3058_v45  ;;  %v947_v58 = vrot.slane %v933_v54, %v3058_v45 }
 0x404   : > { %v1371_v51 = vmul.f32 1.442695, %v1366_v27  ;;  %v1373_v52 = vmul.f32 1.442695, %v1367_v36  ;;  %v1375_v53 = vmul.f32 1.442695, %v1368_v34 }
 0x405   : > { %v952_v59 = vcombine.low %v924_v55, %v931_v56  ;;  %v2226_v60 = vcombine.high %v924_v55, %v931_v56  ;;  %v968_v61 = vcombine.low %v940_v57, %v947_v58  ;;  %v2227_v62 = vcombine.high %v940_v57, %v947_v58  ;;  %v1411_v34 = vld [vmem:[#allocation4 + $0x10] sm:$0xff] }
 0x407   : > { %v959_v63 = vrot.slane %v952_v59, %v3055_v39  ;;  %v967_v2 = vrot.slane %v2226_v60, %v3055_v39  ;;  %v975_v3 = vrot.slane %v968_v61, %v3055_v39  ;;  %v983_v4 = vrot.slane %v2227_v62, %v3055_v39 }
 0x409   : > { %v984_v5 = vcombine.low %v959_v63, %v967_v2  ;;  %v1000_v7 = vcombine.low %v975_v3, %v983_v4  ;;  %v985_v8 = vcombine.high %v959_v63, %v967_v2  ;;  %v1001_v9 = vcombine.high %v975_v3, %v983_v4 }
 0x40b   : > { %v992_v10 = vrot.slane %v984_v5, %v3058_v45  ;;  %v1008_v12 = vrot.slane %v1000_v7, %v3058_v45  ;;  %v999_v13 = vrot.slane %v985_v8, %v3058_v45  ;;  %v1015_v33 = vrot.slane %v1001_v9, %v3058_v45 }
 0x40d   : > { %v1016_v15 = vcombine.low %v992_v10, %v1008_v12  ;;  %v1017_v18 = vcombine.high %v992_v10, %v1008_v12  ;;  %v1018_v19 = vcombine.low %v999_v13, %v1015_v33  ;;  %v1019_v21 = vcombine.high %v999_v13, %v1015_v33 }
 0x40f   : > { %2322 = vmatpush3.msra.mxu0 %v1016_v15  ;;  %2327 = vmatpush3.msra.mxu1 %v1017_v18 }
 0x410   : > { %2331 = vmatprep.subr.mxu0 %v2730_v1  ;;  %2336 = vmatprep.subr.mxu1 %v2730_v1 }
 0x466   : > { %v1380_v23 = vpop.permute.xlu0 %1379 }
 0x467   : > { %v1397_v16 = vsub.f32 %v3145_v6, %v1380_v23 }
 0x469   : > { %v1401_v29 = vmul.f32 1.442695, %v1397_v16 }
 0x46b   : > { %2486 = vpow2.f32 %v1401_v29 }
 0x46e   : > { %v1390_v30 = vpop.permute.xlu1 %1389 }
 0x46f   : > { %v1399_v37 = vsub.f32 %v3153_v28, %v1390_v30  ;;  %v1438_v30 = vld [vmem:[#allocation5] sm:$0xff] }
 0x471   : > { %v1405_v38 = vmul.f32 1.442695, %v1399_v37 }
 0x472   : > { %v1385_v40 = vpop.permute.xlu1 %1384 }
 0x473   : > { %2488 = vpow2.f32 %v1405_v38  ;;  %v1398_v41 = vsub.f32 %v3149_v11, %v1385_v40 }
 0x475   : > { %v2487_v42 = vpop.eup %2486  ;;  %v1403_v43 = vmul.f32 1.442695, %v1398_v41 }
 0x476   : > { %v1395_v44 = vpop.permute.xlu1 %1394  ;;  %2324 = vmatmul.mubr.msk.f32.vlgmr.msra.gmra.mrb[4].mxu0 %vm597_vm2, %v2487_v42  ;;  %v1417_v46 = vsel %vm597_vm2, %v2487_v42, 0.0  ;;  %v1975_v42 = vld [vmem:[#allocation12] sm:$0xff] }
 0x477   : > { %2490 = vpow2.f32 %v1403_v43  ;;  %v1400_v6 = vsub.f32 %v3155_v14, %v1395_v44  ;;  %2332 = vmatpush3.msra.mxu0 %v1018_v19  ;;  %1418 = vadd.xlane.f32.xlu1 %v1417_v46  ;;  %v1976_v43 = vld [vmem:[#allocation12 + $0x8] sm:$0xff] }
 0x478   : > { %2333 = vmatprep.mubr.msk.f32.mxu0 %vm2729_vm0, %v2730_v1  ;;  %2364 = vmatprep.subr.bf16.mxu0 %v2728_v0 }
 0x479   : > { %v1407_v28 = vmul.f32 1.442695, %v1400_v6  ;;  %v2365_v6 = vpack.c.bf16 %v1976_v43, %v1975_v42 }
 0x47b   : > { %2492 = vpow2.f32 %v1407_v28  ;;  %v1440_v28 = vld [vmem:[#allocation5 + $0x10] sm:$0xff] }
 0x47c   : > { %2494 = vpow2.f32 %v1371_v51 }
 0x47d   : > { %v2489_v11 = vpop.eup %2488  ;;  %2496 = vpow2.f32 %v1373_v52  ;;  %v1441_v52 = vld [vmem:[#allocation5 + $0x18] sm:$0xff] }
 0x47e   : > { %2334 = vmatmul.mubr.msk.f32.vlgmr.msra.gmra.mrb[6].mxu0 %vm597_vm2, %v2489_v11  ;;  %v1423_v49 = vsel %vm597_vm2, %v2489_v11, 0.0 }
 0x47f   : > { %2349 = vmatprep.mubr.msk.f32.mxu0 %vm2729_vm0, %v2730_v1  ;;  %2366 = vmatpush3.bf16.msra.mxu0 %v2365_v6 }
 0x480   : > { %2367 = vmatprep.subr.bf16.mxu0 %v2728_v0 }
 0x481   : > { %v2491_v47 = vpop.eup %2490 }
 0x482   : > { %2329 = vmatmul.mubr.msk.f32.vlgmr.msra.gmra.mrb[8].mxu1 %vm597_vm2, %v2491_v47  ;;  %v1420_v14 = vsel %vm597_vm2, %v2491_v47, 0.0 }
 0x483   : > { %2337 = vmatpush3.msra.mxu1 %v1019_v21  ;;  %1421 = vadd.xlane.f32.xlu0 %v1420_v14  ;;  %v1439_v14 = vld [vmem:[#allocation5 + $0x8] sm:$0xff] }
 0x484   : > { %2338 = vmatprep.mubr.msk.f32.mxu1 %vm2729_vm0, %v2730_v1  ;;  %v1369_v1 = vmul.f32 1.442695, %v1365_v35 }
 0x485   : > { %v2493_v48 = vpop.eup %2492 }
 0x486   : > { %2339 = vmatmul.mubr.msk.f32.vlgmr.msra.gmra.mrb[10].mxu1 %vm597_vm2, %v2493_v48  ;;  %v1426_v50 = vsel %vm597_vm2, %v2493_v48, 0.0  ;;  %2498 = vpow2.f32 %v1369_v1  ;;  %v2495_v54 = vpop.eup %2494 }
 0x487   : > { %1424 = vadd.xlane.f32.xlu0 %v1423_v49  ;;  %1427 = vadd.xlane.f32.xlu1 %v1426_v50  ;;  %2500 = vpow2.f32 %v1375_v53  ;;  %v2497_v25 = vpop.eup %2496  ;;  %v1414_v55 = vmul.f32 %v2495_v54, %v1410_v24 }
 0x488   : > { %v1415_v58 = vmul.f32 %v2497_v25, %v1411_v34 }
 0x490   : > { %v2499_v17 = vpop.eup %2498 }
 0x491   : > { %v2501_v27 = vpop.eup %2500  ;;  %v1413_v32 = vmul.f32 %v2499_v17, %v1409_v26 }
 0x492   : > { %v1416_v57 = vmul.f32 %v2501_v27, %v1412_v31 }
 0x498   : > { %1449 = vperm.xlu1 %2485, %v2495_v54  }
 0x49c   : > { %1454 = vperm.xlu1 %2485, %v2497_v25  }
 0x49d   : > { %1444 = vperm.xlu0 %2484, %v2499_v17  }
 0x4a1   : > { %1459 = vperm.xlu0 %2484, %v2501_v27  }
 0x504   : > { %v1419_v36 = vpop.xlane.xlu1 %1418 }
 0x505   : > { %v1429_v22 = vadd.f32 %v1419_v36, %v1413_v32 }
 0x507   : > { %1434 = vst.msk [vmem:[#allocation4] sm:$0xff] %vm602_vm3, %v1429_v22 }
 0x50e   : > { %v1773_v35 = vld [vmem:[#allocation4] sm:$0xff] }
 0x50f   : > { %2502 = vrcp.f32 %v1773_v35 }
 0x510   : > { %v1422_v20 = vpop.xlane.xlu0 %1421 }
 0x511   : > { %v1430_v56 = vadd.f32 %v1422_v20, %v1414_v55 }
 0x513   : > { %1435 = vst.msk [vmem:[#allocation4 + $0x8] sm:$0xff] %vm602_vm3, %v1430_v56 }
 0x514   : > { %v1428_v59 = vpop.xlane.xlu1 %1427  ;;  %v1425_v60 = vpop.xlane.xlu0 %1424 }
 0x515   : > { %v1432_v61 = vadd.f32 %v1428_v59, %v1416_v57  ;;  %v1431_v62 = vadd.f32 %v1425_v60, %v1415_v58 }
 0x517   : > { %1437 = vst.msk [vmem:[#allocation4 + $0x18] sm:$0xff] %vm602_vm3, %v1432_v61  ;;  %1436 = vst.msk [vmem:[#allocation4 + $0x10] sm:$0xff] %vm602_vm3, %v1431_v62 }
 0x518   : > { %v1450_v38 = vpop.permute.xlu1 %1449 }
 0x519   : > { %v2503_v63 = vpop.eup %2502  ;;  %v1463_v51 = vmul.f32 %v1450_v38, %v1439_v14 }
 0x51a   : > { %v1781_v2 = vmul.f32 %v2503_v63, %v1773_v35  ;;  %v1774_v3 = vld [vmem:[#allocation4 + $0x8] sm:$0xff] }
 0x51b   : > { %2504 = vrcp.f32 %v1774_v3 }
 0x51c   : > { %v1785_v4 = vsub.f32 2.0, %v1781_v2  ;;  %v1445_v37 = vpop.permute.xlu0 %1444  ;;  %v1455_v11 = vpop.permute.xlu1 %1454 }
 0x51d   : > { %v1462_v40 = vmul.f32 %v1445_v37, %v1438_v30  ;;  %v1464_v47 = vmul.f32 %v1455_v11, %v1440_v28 }
 0x51e   : > { %v1789_v5 = vmul.f32 %v2503_v63, %v1785_v4  ;;  %v1776_v7 = vld [vmem:[#allocation4 + $0x18] sm:$0xff]  ;;  %v1775_v8 = vld [vmem:[#allocation4 + $0x10] sm:$0xff] }
 0x51f   : > { %2506 = vrcp.f32 %v1776_v7 }
 0x520   : > { %1799 = vperm.xlu1 %2485, %v1789_v5   ;;  %2508 = vrcp.f32 %v1775_v8  ;;  %v1460_v1 = vpop.permute.xlu0 %1459 }
 0x521   : > { %v1465_v17 = vmul.f32 %v1460_v1, %v1441_v52 }
 0x525   : > { %v2505_v9 = vpop.eup %2504 }
 0x526   : > { %v1782_v10 = vmul.f32 %v2505_v9, %v1774_v3 }
 0x528   : > { %v1786_v12 = vsub.f32 2.0, %v1782_v10  ;;  %v1977_v10 = vld [vmem:[#allocation12 + $0x10] sm:$0xff] }
 0x529   : > { %v2507_v13 = vpop.eup %2506 }
 0x52a   : > { %v2509_v33 = vpop.eup %2508  ;;  %v1790_v15 = vmul.f32 %v2505_v9, %v1786_v12  ;;  %v1784_v18 = vmul.f32 %v2507_v13, %v1776_v7  ;;  %v1978_v12 = vld [vmem:[#allocation12 + $0x18] sm:$0xff] }
 0x52b   : > { %v1783_v19 = vmul.f32 %v2509_v33, %v1775_v8 }
 0x52c   : > { %1804 = vperm.xlu0 %2484, %v1790_v15   ;;  %v1788_v21 = vsub.f32 2.0, %v1784_v18 }
 0x52d   : > { %v1787_v23 = vsub.f32 2.0, %v1783_v19  ;;  %v2368_v19 = vpack.c.bf16 %v1978_v12, %v1977_v10 }
 0x52e   : > { %v1792_v16 = vmul.f32 %v2507_v13, %v1788_v21 }
 0x52f   : > { %v1791_v29 = vmul.f32 %v2509_v33, %v1787_v23  ;;  %2369 = vmatpush3.bf16.msra.mxu0 %v2368_v19 }
 0x530   : > { %1814 = vperm.xlu0 %2484, %v1792_v16  }
 0x531   : > { %1809 = vperm.xlu1 %2485, %v1791_v29  }
 0x549   : > { %v1535_v41 = vpop.f32.mrb[4].mxu0 }
 0x54a   : > { %v1758_v44 = vadd.f32 %v1535_v41, %v1462_v40  ;;  %v2325_v46 = vpop.f32.mrb[5].mxu0 }
 0x54c   : > { %1762 = vst.msk [vmem:[#allocation5] sm:$0xff] %vm597_vm2, %v1758_v44 }
 0x551   : > { %v1681_v48 = vpop.f32.mrb[6].mxu0 }
 0x552   : > { %v1760_v49 = vadd.f32 %v1681_v48, %v1464_v47  ;;  %v2335_v50 = vpop.f32.mrb[7].mxu0 }
 0x553   : > { %v1793_v55 = vld [vmem:[#allocation5] sm:$0xff] }
 0x554   : > { %1764 = vst.msk [vmem:[#allocation5 + $0x10] sm:$0xff] %vm597_vm2, %v1760_v49 }
 0x555   : > { %v1608_v53 = vpop.f32.mrb[8].mxu1 }
 0x556   : > { %v1759_v54 = vadd.f32 %v1608_v53, %v1463_v51  ;;  %v2330_v25 = vpop.f32.mrb[9].mxu1  ;;  %v2242_v53 = vld [vmem:[%s3348_s5] ss:$0 sm:$0xff] }
 0x558   : > { %1763 = vst.msk [vmem:[#allocation5 + $0x8] sm:$0xff] %vm597_vm2, %v1759_v54 }
 0x559   : > { %v1754_v27 = vpop.f32.mrb[10].mxu1 }
 0x55a   : > { %v1761_v26 = vadd.f32 %v1754_v27, %v1465_v17  ;;  %v2340_v32 = vpop.f32.mrb[11].mxu1 }
 0x55b   : > { %v1795_v34 = vld [vmem:[#allocation5 + $0x10] sm:$0xff] }
 0x55c   : > { %1765 = vst.msk [vmem:[#allocation5 + $0x18] sm:$0xff] %vm597_vm2, %v1761_v26 }
 0x55f   : > { %v1794_v22 = vld [vmem:[#allocation5 + $0x8] sm:$0xff] }
 0x563   : > { %v1796_v24 = vld [vmem:[#allocation5 + $0x18] sm:$0xff] }
 0x59f   : > { %v1800_v36 = vpop.permute.xlu1 %1799 }
 0x5a0   : > { %v1817_v57 = vmul.f32 %v1800_v36, %v1793_v55 }
 0x5ab   : > { %v1805_v0 = vpop.permute.xlu0 %1804 }
 0x5ac   : > { %v1818_v20 = vmul.f32 %v1805_v0, %v1794_v22 }
 0x5af   : > { %v1815_v35 = vpop.permute.xlu0 %1814 }
 0x5b0   : > { %v1810_v31 = vpop.permute.xlu1 %1809  ;;  %v1820_v56 = vmul.f32 %v1815_v35, %v1796_v24 }
 0x5b1   : > { %v1819_v58 = vmul.f32 %v1810_v31, %v1795_v34 }
 0x5b2   : > { %v1837_v59 = vcombine.low %v1818_v20, %v1820_v56  ;;  %v1838_v60 = vcombine.high %v1818_v20, %v1820_v56 }
 0x5b3   : > { %v1821_v61 = vcombine.low %v1817_v57, %v1819_v58  ;;  %v1822_v62 = vcombine.high %v1817_v57, %v1819_v58 }
 0x5b4   : > { %v1845_v63 = vrot.slane %v1837_v59, %v3055_v39  ;;  %v1852_v2 = vrot.slane %v1838_v60, %v3055_v39 }
 0x5b5   : > { %v1829_v3 = vrot.slane %v1821_v61, %v3055_v39  ;;  %v1836_v4 = vrot.slane %v1822_v62, %v3055_v39 }
 0x5b7   : > { %v1853_v5 = vcombine.low %v1829_v3, %v1845_v63  ;;  %v1854_v7 = vcombine.high %v1829_v3, %v1845_v63  ;;  %v1869_v8 = vcombine.low %v1836_v4, %v1852_v2  ;;  %v1870_v9 = vcombine.high %v1836_v4, %v1852_v2 }
 0x5b9   : > { %v1861_v13 = vrot.slane %v1853_v5, %v3058_v45  ;;  %v1868_v33 = vrot.slane %v1854_v7, %v3058_v45  ;;  %v1877_v15 = vrot.slane %v1869_v8, %v3058_v45  ;;  %v1884_v18 = vrot.slane %v1870_v9, %v3058_v45 }
 0x5bb   : > { %v1889_v21 = vcombine.low %v1861_v13, %v1868_v33  ;;  %v2240_v23 = vcombine.high %v1861_v13, %v1868_v33  ;;  %v1905_v16 = vcombine.low %v1877_v15, %v1884_v18  ;;  %v2241_v29 = vcombine.high %v1877_v15, %v1884_v18 }
 0x5bd   : > { %v1896_v30 = vrot.slane %v1889_v21, %v3055_v39  ;;  %v1904_v37 = vrot.slane %v2240_v23, %v3055_v39  ;;  %v1912_v38 = vrot.slane %v1905_v16, %v3055_v39  ;;  %v1920_v40 = vrot.slane %v2241_v29, %v3055_v39 }
 0x5bf   : > { %v1922_v41 = vcombine.high %v1896_v30, %v1904_v37  ;;  %v1938_v42 = vcombine.high %v1912_v38, %v1920_v40  ;;  %v1921_v43 = vcombine.low %v1896_v30, %v1904_v37  ;;  %v1937_v44 = vcombine.low %v1912_v38, %v1920_v40 }
 0x5c1   : > { %v1936_v46 = vrot.slane %v1922_v41, %v3058_v45  ;;  %v1952_v6 = vrot.slane %v1938_v42, %v3058_v45  ;;  %v1929_v28 = vrot.slane %v1921_v43, %v3058_v45  ;;  %v1945_v11 = vrot.slane %v1937_v44, %v3058_v45 }
 0x5c3   : > { %v1955_v47 = vcombine.low %v1936_v46, %v1952_v6  ;;  %v1954_v14 = vcombine.high %v1929_v28, %v1945_v11  ;;  %v1953_v48 = vcombine.low %v1929_v28, %v1945_v11  ;;  %v1956_v39 = vcombine.high %v1936_v46, %v1952_v6 }
 0x5c5   : > { %1962 = vrot.lane.b32.xlu0 %v1955_v47, %s2739_s28  ;;  %1958 = vrot.lane.b32.xlu1 %v1954_v14, %s2740_s25 }
 0x5c9   : > { %1966 = vrot.lane.b32.xlu1 %v1956_v39, %s2741_s12 }
 0x637   : > { %v1959_v49 = vpop.permute.xlu1 %1958  ;;  %v1963_v50 = vpop.permute.xlu0 %1962 }
 0x638   : > { %v1970_v51 = vsel %vm597_vm2, %v1953_v48, %v1959_v49 }
 0x639   : > { %v1972_v52 = vsel %vm1971_vm5, %v1970_v51, %v1963_v50 }
 0x63b   : > { %v1967_v45 = vpop.permute.xlu1 %1966 }
 0x63c   : > { %v1974_v1 = vsel %vm1973_vm6, %v1972_v52, %v1967_v45 }
 0x63d   : > { %2350 = vmatmul.mubr.msk.f32.vlgmr.msra.gmra.mrb[8].mxu0 %vm376_vm1, %v1974_v1 }
 0x710   : > { %v2056_v54 = vpop.f32.mrb[8].mxu0 }
 0x711   : > { %v2057_v25 = vadd.f32 %v2242_v53, %v2056_v54  ;;  %v2351_v17 = vpop.f32.mrb[9].mxu0 }
 0x713   : > { %2060 = vst.msk [vmem:[%s359_s16] sm:$0xff] %vm376_vm1, %v2057_v25 }
 0x714   : > { %2639 = shalt.err (!%p2636_p7)
}
 0x715   : > { %s2640_s2 = scalar_lea.hbm %s3293_s18, 128  ;;  %s2644_s4 = scalar_lea.hbm %s3349_s6, 256 }
 0x716   : > { %p2641_p13 = scmp.ne.s32.totalorder %s3293_s18, %s2640_s2  ;;  %p2645_p2 = scmp.lt.u32.totalorder %s3293_s18, %s3349_s6 }
 0x717   : > { %p2646_p12 = scmp.lt.u32.totalorder %s2644_s4, %s2640_s2  ;;  %p2648_p1 = scmp.lt.u32.totalorder %s2640_s2, %s3293_s18 }
 0x718   : > { %p2642_p8 = pnand %p2641_p13, %p3376_p6 }
 0x719   : > { %p2647_p0 = por %p2646_p12, %p2645_p2 }
 0x71a   : > { %p2643_p11 = pneg %p2642_p8 }
 0x71b   : > { %p2649_p10 = por %p2648_p1, %p2647_p0 }
 0x71d   : > { %p2650_p3 = pnand %p2649_p10, %p2643_p11 }
 0x71f   : > { %2653 = shalt.err (!%p2650_p3)
}
 0x720   : > { %2382 = dma.vmem_to_hbm [thread:$0]  (%p3376_p6), %s3295_s9, 128, %s3293_s18, %s2062_s27  }
 0x721 PF: > { %s2088_s12 = sand.u32 1, %s2700_s21   ;;  %p3377_p4 = scmp.ne.s32.totalorder %s3360_s30, 0 }
 0x722   : > { %p3378_p9 = scmp.ge.s32.totalorder %s2720_s26, 2  ;;  %s2089_s20 = scalar_lea.sflag [#allocation8], %s2088_s12 }
 0x724   : > { %p2399_p5 = pnand %p3378_p9, %p3377_p4 }
 0x726   : > { %2695 = dma.done.wait (!%p2399_p5), %s2089_s20, 128  }
 0x727   : > { %2697 = vsyncadd (!%p2399_p5), %s2089_s20, 4294967168  ;;  %s26_s26 = sadd.s32 1, %s2720_s26   ;;  %s3379_s10 = sld [smem:[#allocation22_spill]] }
 0x728   : > { %p23_p7 = scmp.ge.s32.totalorder %s26_s26, 4   ;;  %s3380_s24 = sld [smem:[#allocation20_spill]] }
 0x729   : > { %s3381_s25 = sld [smem:[#allocation21_spill]]  ;;  %s3382_s21 = smov %s2704_s22 }
 0x72a   : > { %s3383_s22 = smov %s2708_s23  ;;  %25 = sbr.rel (!%p23_p7) target bundleno = 12 (0xc), region = 122 }
 0x72d   : > { %s3384_s23 = smov %s3379_s10 }
 0x731   :  { %2094 = vsyncpa [#allocation7], 1 }
 0x732   :  { %2096 = vsyncpa [#allocation7 + $0x1], 1 }
 0x733   :  { %2097 = vsyncpa [#allocation10], 1 }
 0x734   :  { %2099 = vsyncpa [#allocation10 + $0x1], 1 }
 0x735   :  { %2100 = vsyncpa [#allocation13], 1 }
 0x736   :  { %2101 = vsyncpa [#allocation8], 1 }
 0x737   :  { %2103 = vsyncpa [#allocation8 + $0x1], 1 }

</bundles_post_ra>
